<compile_context>
chip_gen: v5e
topology: v5e:2x2
jax: 0.10.0
libtpu: 0.0.40
codegen_flags: <defaults>
</compile_context>

<pallas_src>
import math
import functools

import jax
import jax.numpy as jnp
from jax.experimental import pallas as pl
from jax.experimental.pallas import tpu as pltpu


_VMEM = pl.BlockSpec(memory_space=pltpu.MemorySpace.VMEM)
_EPS = 1e-5


# ----------------------------------------------------------------------------
# BN folding (eval mode) + weight reshape for the concatenated-tap matmul
# ----------------------------------------------------------------------------
def _fold_bn_cat(conv_w, bn):
    """conv_w: (C_out, C_in, K) PyTorch layout.  Returns a (K*C_in, C_out) bf16
    weight (row index = k*C_in + c_in, BN scale folded in) and a (1, C_out) f32
    bias."""
    gamma, beta, mean, var = bn
    scale = gamma / jnp.sqrt(var + _EPS)                           # (C_out,)
    w = jnp.transpose(conv_w, (2, 1, 0)) * scale[None, None, :]    # (K, C_in, C_out)
    K, Ci, Co = w.shape
    bias = beta - mean * scale
    return (w.reshape(K * Ci, Co).astype(jnp.bfloat16),
            bias.reshape(1, Co).astype(jnp.float32))


# ----------------------------------------------------------------------------
# Fully fused network kernel
# ----------------------------------------------------------------------------
def _resnet_kernel(*refs, plan, B, L, K, avg_k, n_win):
    it = iter(refs)
    ph = [next(it) for _ in range(4)]               # phase-split padded input
    w_s, b_s = next(it), next(it)                   # stem (7*C_in, 16) / (1, 16)
    blocks = []
    for has_down in plan:
        w1, b1, w2, b2 = next(it), next(it), next(it), next(it)
        wd, bd = (next(it), next(it)) if has_down else (None, None)
        blocks.append((w1, b1, w2, b2, wd, bd))
    fc_w, fc_b = next(it), next(it)                 # permuted fc weight / bias
    preds_ref, feat_ref = next(it), next(it)

    Cin = ph[0].shape[-1]
    Cs = b_s.shape[-1]
    M = B * L

    # ---- stem: conv7 (s=2, p=3) + BN + ReLU + maxpool3 (s=2, p=1) ----------
    # conv output position 2m (even) reads padded index 4m + k,
    # position 2m+1 (odd) reads 4m + 2 + k; phase split mod 4 makes every tap a
    # contiguous static slice.  Both parities share one (2*B*L, 7*Cin) matmul.
    parities = []
    for base in (0, 2):
        taps = []
        for k in range(K):
            t = base + k
            taps.append(ph[t % 4][:, t // 4: t // 4 + L, :])
        parities.append(jnp.concatenate(taps, axis=-1))            # (B, L, K*Cin)
    xcat = jnp.concatenate(parities, axis=1)                       # (B, 2L, K*Cin)
    conv = jnp.dot(xcat.reshape(2 * M, K * Cin).astype(jnp.bfloat16), w_s[...],
                   preferred_element_type=jnp.float32) + b_s[...]
    conv = jnp.maximum(conv, 0.0).reshape(B, 2 * L, Cs)
    ye = conv[:, :L, :]                                            # conv[2m]
    yo = conv[:, L:, :]                                            # conv[2m+1]
    prev = jnp.concatenate(
        [jnp.full((B, 1, Cs), -jnp.inf, jnp.float32), yo[:, :L - 1, :]],
        axis=1)                                                    # conv[2m-1]
    h = jnp.maximum(jnp.maximum(ye, yo), prev)                     # (B, L, Cs)

    # ---- BasicBlocks (conv3+BN+ReLU + conv3+BN + residual(+1x1) + ReLU) ----
    def taps3(v):
        # k=3, pad=1 conv: concatenate the 3 shifted slices along contraction.
        C = v.shape[-1]
        z = jnp.zeros((B, 1, C), jnp.float32)
        vp = jnp.concatenate([z, v, z], axis=1)                    # (B, L+2, C)
        return jnp.concatenate(
            [vp[:, 0:L], vp[:, 1:L + 1], vp[:, 2:L + 2]],
            axis=-1).reshape(M, 3 * C)

    for w1, b1, w2, b2, wd, bd in blocks:
        Ci, Co = h.shape[-1], w1.shape[-1]
        a1 = jnp.dot(taps3(h).astype(jnp.bfloat16), w1[...],
                     preferred_element_type=jnp.float32) + b1[...]
        o1 = jnp.maximum(a1, 0.0).reshape(B, L, Co)
        a2 = jnp.dot(taps3(o1).astype(jnp.bfloat16), w2[...],
                     preferred_element_type=jnp.float32) + b2[...]
        if wd is not None:                                         # 1x1 + BN
            res = jnp.dot(h.reshape(M, Ci).astype(jnp.bfloat16), wd[...],
                          preferred_element_type=jnp.float32) + bd[...]
        else:
            res = h.reshape(M, Ci)
        h = jnp.maximum(a2 + res, 0.0).reshape(B, L, Co)

    # ---- head: avgpool(avg_k, s=1) + flatten + fc --------------------------
    C_last = h.shape[-1]
    inv = 1.0 / avg_k
    pooled = [jnp.sum(h[:, j:j + avg_k, :], axis=1) * inv for j in range(n_win)]
    cfeat = jnp.concatenate(pooled, axis=-1)         # (B, n_win*C_last), j-major
    feat_ref[...] = cfeat                            # lane-dense HBM write
    preds_ref[...] = (jnp.dot(cfeat, fc_w[...],
                              preferred_element_type=jnp.float32) + fc_b[...])


# ----------------------------------------------------------------------------
# Forward wrapper (trace-time weight folding + layout plumbing only)
# ----------------------------------------------------------------------------
def resnet_forward(params, x):
    # TODO(synk): BatchNorm uses eval-mode running statistics; training-mode
    # batch statistics are not reproduced here.
    B, C_in, L_in = x.shape
    x = jnp.transpose(x, (0, 2, 1))                  # (B, C, L) -> (B, L, C), once

    # stem geometry
    K, stride, pad = 7, 2, 3
    pk, ps, pp = 3, 2, 1
    L_conv = (L_in + 2 * pad - K) // stride + 1
    L = (L_conv + 2 * pp - pk) // ps + 1             # stem output length
    assert L_conv == 2 * L, "even/odd maxpool fusion requires L_conv == 2*L_pool"

    x_pad = jnp.pad(x, ((0, 0), (pad, pad), (0, 0)))
    max_idx = 4 * (L - 1) + 2 + (K - 1)              # last padded index read
    Lp4 = -(-max(x_pad.shape[1], max_idx + 1) // 4) * 4
    x_pad = jnp.pad(x_pad, ((0, 0), (0, Lp4 - x_pad.shape[1]), (0, 0)))
    phases = [x_pad[:, r::4, :] for r in range(4)]   # mod-4 phase split (1x data)

    args = list(phases)
    w_s, b_s = _fold_bn_cat(params["conv1_w"], params["bn1"])
    args += [w_s, b_s]

    plan = []
    C_last = None
    for stage in params["stages"]:
        for bp in stage:
            w1, b1 = _fold_bn_cat(bp["conv1_w"], bp["bn1"])
            w2, b2 = _fold_bn_cat(bp["conv2_w"], bp["bn2"])
            args += [w1, b1, w2, b2]
            has_down = "down_w" in bp
            if has_down:
                wd, bd = _fold_bn_cat(bp["down_w"], bp["down_bn"])
                args += [wd, bd]
            plan.append(has_down)
            C_last = bp["conv2_w"].shape[0]

    avg_k = 7
    n_win = L - avg_k + 1
    assert n_win >= 1
    fan_in, n_cls = params["fc_w"].shape
    assert fan_in == C_last * n_win, "fc fan-in must equal C_last * n_win"
    # PyTorch feat order is c*n_win + j; kernel produces j*C_last + c -> permute W.
    fc_wp = (params["fc_w"].reshape(C_last, n_win, n_cls)
             .transpose(1, 0, 2).reshape(fan_in, n_cls).astype(jnp.float32))
    args += [fc_wp, params["fc_b"].reshape(1, n_cls).astype(jnp.float32)]

    kern = functools.partial(_resnet_kernel, plan=tuple(plan), B=B, L=L, K=K,
                             avg_k=avg_k, n_win=n_win)
    preds, cfeat = pl.pallas_call(
        kern,
        out_shape=(jax.ShapeDtypeStruct((B, n_cls), jnp.float32),
                   jax.ShapeDtypeStruct((B, n_win * C_last), jnp.float32)),
        in_specs=[_VMEM] * len(args),
        out_specs=(_VMEM, _VMEM),
    )(*args)

    # un-interleave to PyTorch's .view(B, C*L) ordering: feat[b, c*n_win + j]
    feat = cfeat.reshape(B, n_win, C_last).transpose(0, 2, 1).reshape(B, fan_in)
    return preds, feat


# ----------------------------------------------------------------------------
# Parameter init (mirrors the PyTorch __init__; strides are static config)
# ----------------------------------------------------------------------------
def _init_bn(c):
    # (gamma, beta, running_mean, running_var) — PyTorch init: 1, 0, 0, 1
    return (jnp.ones(c, jnp.float32), jnp.zeros(c, jnp.float32),
            jnp.zeros(c, jnp.float32), jnp.ones(c, jnp.float32))


def _init_conv(key, c_out, c_in, k):
    n = k * c_out
    return (jax.random.normal(key, (c_out, c_in, k), jnp.float32)
            * math.sqrt(2.0 / n))


def init_resnet_params(key, in_dim, num_classes, layers):
    keys = iter(jax.random.split(key, 128))
    params = {"conv1_w": _init_conv(next(keys), 16, in_dim, 7),
              "bn1": _init_bn(16)}
    inplanes = 16
    stages = []
    for planes, nblocks in zip([16, 32, 64, 128], layers):
        blocks = []
        for bi in range(nblocks):
            bp = {
                "conv1_w": _init_conv(next(keys), planes, inplanes, 3),
                "bn1": _init_bn(planes),
                "conv2_w": _init_conv(next(keys), planes, planes, 3),
                "bn2": _init_bn(planes),
            }
            # _make_layer is always called with stride=1; downsample only when
            # the channel count changes.
            if bi == 0 and inplanes != planes:
                bp["down_w"] = _init_conv(next(keys), planes, inplanes, 1)
                bp["down_bn"] = _init_bn(planes)
            inplanes = planes
            blocks.append(bp)
        stages.append(blocks)
    params["stages"] = stages
    fan_in = 256
    bound = 1.0 / math.sqrt(fan_in)
    params["fc_w"] = jax.random.uniform(next(keys), (fan_in, num_classes),
                                        jnp.float32, -bound, bound)
    params["fc_b"] = jax.random.uniform(next(keys), (num_classes,),
                                        jnp.float32, -bound, bound)
    return params


if __name__ == "__main__":
    key = jax.random.PRNGKey(0)
    k_param, k_x = jax.random.split(key)

    # L=32 -> conv1:16 -> maxpool:8 -> avgpool(7):2 -> 128*2 = 256 = fc fan-in
    B, in_dim, L = 2, 4, 32
    num_classes = 10
    layers = [1, 1, 1, 1]

    params = init_resnet_params(k_param, in_dim, num_classes, layers)
    x = jax.random.normal(k_x, (B, in_dim, L), jnp.float32)

    preds, feat = jax.jit(resnet_forward)(params, x)
    jax.block_until_ready((preds, feat))

    assert preds.shape == (B, num_classes) and feat.shape == (B, 256)
    assert bool(jnp.all(jnp.isfinite(preds))) and bool(jnp.all(jnp.isfinite(feat)))
    print("KERNEL_OK")
</pallas_src>

<mosaic_0001>
module attributes {stable_mosaic.version = 11 : i64} {
  func.func @_resnet_kernel(%arg0: memref<2x10x4xf32, #tpu.memory_space<vmem>>, %arg1: memref<2x10x4xf32, #tpu.memory_space<vmem>>, %arg2: memref<2x10x4xf32, #tpu.memory_space<vmem>>, %arg3: memref<2x10x4xf32, #tpu.memory_space<vmem>>, %arg4: memref<28x16xbf16, #tpu.memory_space<vmem>>, %arg5: memref<1x16xf32, #tpu.memory_space<vmem>>, %arg6: memref<48x16xbf16, #tpu.memory_space<vmem>>, %arg7: memref<1x16xf32, #tpu.memory_space<vmem>>, %arg8: memref<48x16xbf16, #tpu.memory_space<vmem>>, %arg9: memref<1x16xf32, #tpu.memory_space<vmem>>, %arg10: memref<48x32xbf16, #tpu.memory_space<vmem>>, %arg11: memref<1x32xf32, #tpu.memory_space<vmem>>, %arg12: memref<96x32xbf16, #tpu.memory_space<vmem>>, %arg13: memref<1x32xf32, #tpu.memory_space<vmem>>, %arg14: memref<16x32xbf16, #tpu.memory_space<vmem>>, %arg15: memref<1x32xf32, #tpu.memory_space<vmem>>, %arg16: memref<96x64xbf16, #tpu.memory_space<vmem>>, %arg17: memref<1x64xf32, #tpu.memory_space<vmem>>, %arg18: memref<192x64xbf16, #tpu.memory_space<vmem>>, %arg19: memref<1x64xf32, #tpu.memory_space<vmem>>, %arg20: memref<32x64xbf16, #tpu.memory_space<vmem>>, %arg21: memref<1x64xf32, #tpu.memory_space<vmem>>, %arg22: memref<192x128xbf16, #tpu.memory_space<vmem>>, %arg23: memref<1x128xf32, #tpu.memory_space<vmem>>, %arg24: memref<384x128xbf16, #tpu.memory_space<vmem>>, %arg25: memref<1x128xf32, #tpu.memory_space<vmem>>, %arg26: memref<64x128xbf16, #tpu.memory_space<vmem>>, %arg27: memref<1x128xf32, #tpu.memory_space<vmem>>, %arg28: memref<256x10xf32, #tpu.memory_space<vmem>>, %arg29: memref<1x10xf32, #tpu.memory_space<vmem>>, %arg30: memref<2x10xf32, #tpu.memory_space<vmem>>, %arg31: memref<2x256xf32, #tpu.memory_space<vmem>>) attributes {dimension_semantics = [], scalar_prefetch = 0 : i64, scratch_operands = 0 : i64, tpu.core_type = #tpu.core_type<tc>} {
    %c0 = arith.constant 0 : index
    %c0_0 = arith.constant 0 : index
    %c0_1 = arith.constant 0 : index
    %0 = vector.load %arg0[%c0, %c0_0, %c0_1] : memref<2x10x4xf32, #tpu.memory_space<vmem>>, vector<2x8x4xf32>
    %c0_2 = arith.constant 0 : index
    %c0_3 = arith.constant 0 : index
    %c0_4 = arith.constant 0 : index
    %1 = vector.load %arg1[%c0_2, %c0_3, %c0_4] : memref<2x10x4xf32, #tpu.memory_space<vmem>>, vector<2x8x4xf32>
    %c0_5 = arith.constant 0 : index
    %c0_6 = arith.constant 0 : index
    %c0_7 = arith.constant 0 : index
    %2 = vector.load %arg2[%c0_5, %c0_6, %c0_7] : memref<2x10x4xf32, #tpu.memory_space<vmem>>, vector<2x8x4xf32>
    %c0_8 = arith.constant 0 : index
    %c0_9 = arith.constant 0 : index
    %c0_10 = arith.constant 0 : index
    %3 = vector.load %arg3[%c0_8, %c0_9, %c0_10] : memref<2x10x4xf32, #tpu.memory_space<vmem>>, vector<2x8x4xf32>
    %c0_11 = arith.constant 0 : index
    %c1 = arith.constant 1 : index
    %c0_12 = arith.constant 0 : index
    %4 = vector.load %arg0[%c0_11, %c1, %c0_12] : memref<2x10x4xf32, #tpu.memory_space<vmem>>, vector<2x8x4xf32>
    %c0_13 = arith.constant 0 : index
    %c1_14 = arith.constant 1 : index
    %c0_15 = arith.constant 0 : index
    %5 = vector.load %arg1[%c0_13, %c1_14, %c0_15] : memref<2x10x4xf32, #tpu.memory_space<vmem>>, vector<2x8x4xf32>
    %c0_16 = arith.constant 0 : index
    %c1_17 = arith.constant 1 : index
    %c0_18 = arith.constant 0 : index
    %6 = vector.load %arg2[%c0_16, %c1_17, %c0_18] : memref<2x10x4xf32, #tpu.memory_space<vmem>>, vector<2x8x4xf32>
    %7 = tpu.concatenate %0, %1, %2, %3, %4, %5, %6 in 2 : vector<2x8x4xf32>, vector<2x8x4xf32>, vector<2x8x4xf32>, vector<2x8x4xf32>, vector<2x8x4xf32>, vector<2x8x4xf32>, vector<2x8x4xf32> -> vector<2x8x28xf32>
    %c0_19 = arith.constant 0 : index
    %c0_20 = arith.constant 0 : index
    %c0_21 = arith.constant 0 : index
    %8 = vector.load %arg2[%c0_19, %c0_20, %c0_21] : memref<2x10x4xf32, #tpu.memory_space<vmem>>, vector<2x8x4xf32>
    %c0_22 = arith.constant 0 : index
    %c0_23 = arith.constant 0 : index
    %c0_24 = arith.constant 0 : index
    %9 = vector.load %arg3[%c0_22, %c0_23, %c0_24] : memref<2x10x4xf32, #tpu.memory_space<vmem>>, vector<2x8x4xf32>
    %c0_25 = arith.constant 0 : index
    %c1_26 = arith.constant 1 : index
    %c0_27 = arith.constant 0 : index
    %10 = vector.load %arg0[%c0_25, %c1_26, %c0_27] : memref<2x10x4xf32, #tpu.memory_space<vmem>>, vector<2x8x4xf32>
    %c0_28 = arith.constant 0 : index
    %c1_29 = arith.constant 1 : index
    %c0_30 = arith.constant 0 : index
    %11 = vector.load %arg1[%c0_28, %c1_29, %c0_30] : memref<2x10x4xf32, #tpu.memory_space<vmem>>, vector<2x8x4xf32>
    %c0_31 = arith.constant 0 : index
    %c1_32 = arith.constant 1 : index
    %c0_33 = arith.constant 0 : index
    %12 = vector.load %arg2[%c0_31, %c1_32, %c0_33] : memref<2x10x4xf32, #tpu.memory_space<vmem>>, vector<2x8x4xf32>
    %c0_34 = arith.constant 0 : index
    %c1_35 = arith.constant 1 : index
    %c0_36 = arith.constant 0 : index
    %13 = vector.load %arg3[%c0_34, %c1_35, %c0_36] : memref<2x10x4xf32, #tpu.memory_space<vmem>>, vector<2x8x4xf32>
    %c0_37 = arith.constant 0 : index
    %c2 = arith.constant 2 : index
    %c0_38 = arith.constant 0 : index
    %14 = vector.load %arg0[%c0_37, %c2, %c0_38] : memref<2x10x4xf32, #tpu.memory_space<vmem>>, vector<2x8x4xf32>
    %15 = tpu.concatenate %8, %9, %10, %11, %12, %13, %14 in 2 : vector<2x8x4xf32>, vector<2x8x4xf32>, vector<2x8x4xf32>, vector<2x8x4xf32>, vector<2x8x4xf32>, vector<2x8x4xf32>, vector<2x8x4xf32> -> vector<2x8x28xf32>
    %16 = tpu.concatenate %7, %15 in 1 : vector<2x8x28xf32>, vector<2x8x28xf32> -> vector<2x16x28xf32>
    %17 = vector.shape_cast %16 : vector<2x16x28xf32> to vector<32x28xf32>
    %18 = arith.truncf %17 : vector<32x28xf32> to vector<32x28xbf16>
    %c0_39 = arith.constant 0 : index
    %c0_40 = arith.constant 0 : index
    %19 = vector.load %arg4[%c0_39, %c0_40] : memref<28x16xbf16, #tpu.memory_space<vmem>>, vector<28x16xbf16>
    %cst = arith.constant dense<0.000000e+00> : vector<32x16xf32>
    %20 = tpu.matmul %18, %19, %cst {dimension_numbers = #tpu.dot_dimension_numbers<[1], [0], [0], [1], [0, 0, 1, 1], [], []>} : vector<32x28xbf16>, vector<28x16xbf16>, vector<32x16xf32> -> vector<32x16xf32>
    %c0_41 = arith.constant 0 : index
    %c0_42 = arith.constant 0 : index
    %21 = vector.load %arg5[%c0_41, %c0_42] : memref<1x16xf32, #tpu.memory_space<vmem>>, vector<1x16xf32>
    %22 = vector.broadcast %21 : vector<1x16xf32> to vector<32x16xf32>
    %23 = arith.addf %20, %22 : vector<32x16xf32>
    %cst_43 = arith.constant 0.000000e+00 : f32
    %24 = vector.broadcast %cst_43 : f32 to vector<32x16xf32>
    %25 = arith.maximumf %23, %24 : vector<32x16xf32>
    %26 = vector.shape_cast %25 : vector<32x16xf32> to vector<2x16x16xf32>
    %27 = vector.extract_strided_slice %26 {offsets = [0, 0, 0], sizes = [2, 8, 16], strides = [1, 1, 1]} : vector<2x16x16xf32> to vector<2x8x16xf32>
    %28 = vector.extract_strided_slice %26 {offsets = [0, 8, 0], sizes = [2, 8, 16], strides = [1, 1, 1]} : vector<2x16x16xf32> to vector<2x8x16xf32>
    %cst_44 = arith.constant 0xFF800000 : f32
    %29 = vector.broadcast %cst_44 : f32 to vector<2x1x16xf32>
    %30 = vector.extract_strided_slice %28 {offsets = [0, 0, 0], sizes = [2, 7, 16], strides = [1, 1, 1]} : vector<2x8x16xf32> to vector<2x7x16xf32>
    %31 = tpu.concatenate %29, %30 in 1 : vector<2x1x16xf32>, vector<2x7x16xf32> -> vector<2x8x16xf32>
    %32 = arith.maximumf %27, %28 : vector<2x8x16xf32>
    %33 = arith.maximumf %32, %31 : vector<2x8x16xf32>
    %cst_45 = arith.constant 0.000000e+00 : f32
    %34 = vector.broadcast %cst_45 : f32 to vector<2x1x16xf32>
    %35 = tpu.concatenate %34, %33, %34 in 1 : vector<2x1x16xf32>, vector<2x8x16xf32>, vector<2x1x16xf32> -> vector<2x10x16xf32>
    %36 = vector.extract_strided_slice %35 {offsets = [0, 0, 0], sizes = [2, 8, 16], strides = [1, 1, 1]} : vector<2x10x16xf32> to vector<2x8x16xf32>
    %37 = vector.extract_strided_slice %35 {offsets = [0, 1, 0], sizes = [2, 8, 16], strides = [1, 1, 1]} : vector<2x10x16xf32> to vector<2x8x16xf32>
    %38 = vector.extract_strided_slice %35 {offsets = [0, 2, 0], sizes = [2, 8, 16], strides = [1, 1, 1]} : vector<2x10x16xf32> to vector<2x8x16xf32>
    %39 = tpu.concatenate %36, %37, %38 in 2 : vector<2x8x16xf32>, vector<2x8x16xf32>, vector<2x8x16xf32> -> vector<2x8x48xf32>
    %40 = vector.shape_cast %39 : vector<2x8x48xf32> to vector<16x48xf32>
    %41 = arith.truncf %40 : vector<16x48xf32> to vector<16x48xbf16>
    %c0_46 = arith.constant 0 : index
    %c0_47 = arith.constant 0 : index
    %42 = vector.load %arg6[%c0_46, %c0_47] : memref<48x16xbf16, #tpu.memory_space<vmem>>, vector<48x16xbf16>
    %cst_48 = arith.constant dense<0.000000e+00> : vector<16x16xf32>
    %43 = tpu.matmul %41, %42, %cst_48 {dimension_numbers = #tpu.dot_dimension_numbers<[1], [0], [0], [1], [0, 0, 1, 1], [], []>} : vector<16x48xbf16>, vector<48x16xbf16>, vector<16x16xf32> -> vector<16x16xf32>
    %c0_49 = arith.constant 0 : index
    %c0_50 = arith.constant 0 : index
    %44 = vector.load %arg7[%c0_49, %c0_50] : memref<1x16xf32, #tpu.memory_space<vmem>>, vector<1x16xf32>
    %45 = vector.broadcast %44 : vector<1x16xf32> to vector<16x16xf32>
    %46 = arith.addf %43, %45 : vector<16x16xf32>
    %cst_51 = arith.constant 0.000000e+00 : f32
    %47 = vector.broadcast %cst_51 : f32 to vector<16x16xf32>
    %48 = arith.maximumf %46, %47 : vector<16x16xf32>
    %49 = vector.shape_cast %48 : vector<16x16xf32> to vector<2x8x16xf32>
    %cst_52 = arith.constant 0.000000e+00 : f32
    %50 = vector.broadcast %cst_52 : f32 to vector<2x1x16xf32>
    %51 = tpu.concatenate %50, %49, %50 in 1 : vector<2x1x16xf32>, vector<2x8x16xf32>, vector<2x1x16xf32> -> vector<2x10x16xf32>
    %52 = vector.extract_strided_slice %51 {offsets = [0, 0, 0], sizes = [2, 8, 16], strides = [1, 1, 1]} : vector<2x10x16xf32> to vector<2x8x16xf32>
    %53 = vector.extract_strided_slice %51 {offsets = [0, 1, 0], sizes = [2, 8, 16], strides = [1, 1, 1]} : vector<2x10x16xf32> to vector<2x8x16xf32>
    %54 = vector.extract_strided_slice %51 {offsets = [0, 2, 0], sizes = [2, 8, 16], strides = [1, 1, 1]} : vector<2x10x16xf32> to vector<2x8x16xf32>
    %55 = tpu.concatenate %52, %53, %54 in 2 : vector<2x8x16xf32>, vector<2x8x16xf32>, vector<2x8x16xf32> -> vector<2x8x48xf32>
    %56 = vector.shape_cast %55 : vector<2x8x48xf32> to vector<16x48xf32>
    %57 = arith.truncf %56 : vector<16x48xf32> to vector<16x48xbf16>
    %c0_53 = arith.constant 0 : index
    %c0_54 = arith.constant 0 : index
    %58 = vector.load %arg8[%c0_53, %c0_54] : memref<48x16xbf16, #tpu.memory_space<vmem>>, vector<48x16xbf16>
    %cst_55 = arith.constant dense<0.000000e+00> : vector<16x16xf32>
    %59 = tpu.matmul %57, %58, %cst_55 {dimension_numbers = #tpu.dot_dimension_numbers<[1], [0], [0], [1], [0, 0, 1, 1], [], []>} : vector<16x48xbf16>, vector<48x16xbf16>, vector<16x16xf32> -> vector<16x16xf32>
    %c0_56 = arith.constant 0 : index
    %c0_57 = arith.constant 0 : index
    %60 = vector.load %arg9[%c0_56, %c0_57] : memref<1x16xf32, #tpu.memory_space<vmem>>, vector<1x16xf32>
    %61 = vector.broadcast %60 : vector<1x16xf32> to vector<16x16xf32>
    %62 = arith.addf %59, %61 : vector<16x16xf32>
    %63 = vector.shape_cast %33 : vector<2x8x16xf32> to vector<16x16xf32>
    %64 = arith.addf %62, %63 : vector<16x16xf32>
    %cst_58 = arith.constant 0.000000e+00 : f32
    %65 = vector.broadcast %cst_58 : f32 to vector<16x16xf32>
    %66 = arith.maximumf %64, %65 : vector<16x16xf32>
    %67 = vector.shape_cast %66 : vector<16x16xf32> to vector<2x8x16xf32>
    %cst_59 = arith.constant 0.000000e+00 : f32
    %68 = vector.broadcast %cst_59 : f32 to vector<2x1x16xf32>
    %69 = tpu.concatenate %68, %67, %68 in 1 : vector<2x1x16xf32>, vector<2x8x16xf32>, vector<2x1x16xf32> -> vector<2x10x16xf32>
    %70 = vector.extract_strided_slice %69 {offsets = [0, 0, 0], sizes = [2, 8, 16], strides = [1, 1, 1]} : vector<2x10x16xf32> to vector<2x8x16xf32>
    %71 = vector.extract_strided_slice %69 {offsets = [0, 1, 0], sizes = [2, 8, 16], strides = [1, 1, 1]} : vector<2x10x16xf32> to vector<2x8x16xf32>
    %72 = vector.extract_strided_slice %69 {offsets = [0, 2, 0], sizes = [2, 8, 16], strides = [1, 1, 1]} : vector<2x10x16xf32> to vector<2x8x16xf32>
    %73 = tpu.concatenate %70, %71, %72 in 2 : vector<2x8x16xf32>, vector<2x8x16xf32>, vector<2x8x16xf32> -> vector<2x8x48xf32>
    %74 = vector.shape_cast %73 : vector<2x8x48xf32> to vector<16x48xf32>
    %75 = arith.truncf %74 : vector<16x48xf32> to vector<16x48xbf16>
    %c0_60 = arith.constant 0 : index
    %c0_61 = arith.constant 0 : index
    %76 = vector.load %arg10[%c0_60, %c0_61] : memref<48x32xbf16, #tpu.memory_space<vmem>>, vector<48x32xbf16>
    %cst_62 = arith.constant dense<0.000000e+00> : vector<16x32xf32>
    %77 = tpu.matmul %75, %76, %cst_62 {dimension_numbers = #tpu.dot_dimension_numbers<[1], [0], [0], [1], [0, 0, 1, 1], [], []>} : vector<16x48xbf16>, vector<48x32xbf16>, vector<16x32xf32> -> vector<16x32xf32>
    %c0_63 = arith.constant 0 : index
    %c0_64 = arith.constant 0 : index
    %78 = vector.load %arg11[%c0_63, %c0_64] : memref<1x32xf32, #tpu.memory_space<vmem>>, vector<1x32xf32>
    %79 = vector.broadcast %78 : vector<1x32xf32> to vector<16x32xf32>
    %80 = arith.addf %77, %79 : vector<16x32xf32>
    %cst_65 = arith.constant 0.000000e+00 : f32
    %81 = vector.broadcast %cst_65 : f32 to vector<16x32xf32>
    %82 = arith.maximumf %80, %81 : vector<16x32xf32>
    %83 = vector.shape_cast %82 : vector<16x32xf32> to vector<2x8x32xf32>
    %cst_66 = arith.constant 0.000000e+00 : f32
    %84 = vector.broadcast %cst_66 : f32 to vector<2x1x32xf32>
    %85 = tpu.concatenate %84, %83, %84 in 1 : vector<2x1x32xf32>, vector<2x8x32xf32>, vector<2x1x32xf32> -> vector<2x10x32xf32>
    %86 = vector.extract_strided_slice %85 {offsets = [0, 0, 0], sizes = [2, 8, 32], strides = [1, 1, 1]} : vector<2x10x32xf32> to vector<2x8x32xf32>
    %87 = vector.extract_strided_slice %85 {offsets = [0, 1, 0], sizes = [2, 8, 32], strides = [1, 1, 1]} : vector<2x10x32xf32> to vector<2x8x32xf32>
    %88 = vector.extract_strided_slice %85 {offsets = [0, 2, 0], sizes = [2, 8, 32], strides = [1, 1, 1]} : vector<2x10x32xf32> to vector<2x8x32xf32>
    %89 = tpu.concatenate %86, %87, %88 in 2 : vector<2x8x32xf32>, vector<2x8x32xf32>, vector<2x8x32xf32> -> vector<2x8x96xf32>
    %90 = vector.shape_cast %89 : vector<2x8x96xf32> to vector<16x96xf32>
    %91 = arith.truncf %90 : vector<16x96xf32> to vector<16x96xbf16>
    %c0_67 = arith.constant 0 : index
    %c0_68 = arith.constant 0 : index
    %92 = vector.load %arg12[%c0_67, %c0_68] : memref<96x32xbf16, #tpu.memory_space<vmem>>, vector<96x32xbf16>
    %cst_69 = arith.constant dense<0.000000e+00> : vector<16x32xf32>
    %93 = tpu.matmul %91, %92, %cst_69 {dimension_numbers = #tpu.dot_dimension_numbers<[1], [0], [0], [1], [0, 0, 1, 1], [], []>} : vector<16x96xbf16>, vector<96x32xbf16>, vector<16x32xf32> -> vector<16x32xf32>
    %c0_70 = arith.constant 0 : index
    %c0_71 = arith.constant 0 : index
    %94 = vector.load %arg13[%c0_70, %c0_71] : memref<1x32xf32, #tpu.memory_space<vmem>>, vector<1x32xf32>
    %95 = vector.broadcast %94 : vector<1x32xf32> to vector<16x32xf32>
    %96 = arith.addf %93, %95 : vector<16x32xf32>
    %97 = vector.shape_cast %67 : vector<2x8x16xf32> to vector<16x16xf32>
    %98 = arith.truncf %97 : vector<16x16xf32> to vector<16x16xbf16>
    %c0_72 = arith.constant 0 : index
    %c0_73 = arith.constant 0 : index
    %99 = vector.load %arg14[%c0_72, %c0_73] : memref<16x32xbf16, #tpu.memory_space<vmem>>, vector<16x32xbf16>
    %cst_74 = arith.constant dense<0.000000e+00> : vector<16x32xf32>
    %100 = tpu.matmul %98, %99, %cst_74 {dimension_numbers = #tpu.dot_dimension_numbers<[1], [0], [0], [1], [0, 0, 1, 1], [], []>} : vector<16x16xbf16>, vector<16x32xbf16>, vector<16x32xf32> -> vector<16x32xf32>
    %c0_75 = arith.constant 0 : index
    %c0_76 = arith.constant 0 : index
    %101 = vector.load %arg15[%c0_75, %c0_76] : memref<1x32xf32, #tpu.memory_space<vmem>>, vector<1x32xf32>
    %102 = vector.broadcast %101 : vector<1x32xf32> to vector<16x32xf32>
    %103 = arith.addf %100, %102 : vector<16x32xf32>
    %104 = arith.addf %96, %103 : vector<16x32xf32>
    %cst_77 = arith.constant 0.000000e+00 : f32
    %105 = vector.broadcast %cst_77 : f32 to vector<16x32xf32>
    %106 = arith.maximumf %104, %105 : vector<16x32xf32>
    %107 = vector.shape_cast %106 : vector<16x32xf32> to vector<2x8x32xf32>
    %cst_78 = arith.constant 0.000000e+00 : f32
    %108 = vector.broadcast %cst_78 : f32 to vector<2x1x32xf32>
    %109 = tpu.concatenate %108, %107, %108 in 1 : vector<2x1x32xf32>, vector<2x8x32xf32>, vector<2x1x32xf32> -> vector<2x10x32xf32>
    %110 = vector.extract_strided_slice %109 {offsets = [0, 0, 0], sizes = [2, 8, 32], strides = [1, 1, 1]} : vector<2x10x32xf32> to vector<2x8x32xf32>
    %111 = vector.extract_strided_slice %109 {offsets = [0, 1, 0], sizes = [2, 8, 32], strides = [1, 1, 1]} : vector<2x10x32xf32> to vector<2x8x32xf32>
    %112 = vector.extract_strided_slice %109 {offsets = [0, 2, 0], sizes = [2, 8, 32], strides = [1, 1, 1]} : vector<2x10x32xf32> to vector<2x8x32xf32>
    %113 = tpu.concatenate %110, %111, %112 in 2 : vector<2x8x32xf32>, vector<2x8x32xf32>, vector<2x8x32xf32> -> vector<2x8x96xf32>
    %114 = vector.shape_cast %113 : vector<2x8x96xf32> to vector<16x96xf32>
    %115 = arith.truncf %114 : vector<16x96xf32> to vector<16x96xbf16>
    %c0_79 = arith.constant 0 : index
    %c0_80 = arith.constant 0 : index
    %116 = vector.load %arg16[%c0_79, %c0_80] : memref<96x64xbf16, #tpu.memory_space<vmem>>, vector<96x64xbf16>
    %cst_81 = arith.constant dense<0.000000e+00> : vector<16x64xf32>
    %117 = tpu.matmul %115, %116, %cst_81 {dimension_numbers = #tpu.dot_dimension_numbers<[1], [0], [0], [1], [0, 0, 1, 1], [], []>} : vector<16x96xbf16>, vector<96x64xbf16>, vector<16x64xf32> -> vector<16x64xf32>
    %c0_82 = arith.constant 0 : index
    %c0_83 = arith.constant 0 : index
    %118 = vector.load %arg17[%c0_82, %c0_83] : memref<1x64xf32, #tpu.memory_space<vmem>>, vector<1x64xf32>
    %119 = vector.broadcast %118 : vector<1x64xf32> to vector<16x64xf32>
    %120 = arith.addf %117, %119 : vector<16x64xf32>
    %cst_84 = arith.constant 0.000000e+00 : f32
    %121 = vector.broadcast %cst_84 : f32 to vector<16x64xf32>
    %122 = arith.maximumf %120, %121 : vector<16x64xf32>
    %123 = vector.shape_cast %122 : vector<16x64xf32> to vector<2x8x64xf32>
    %cst_85 = arith.constant 0.000000e+00 : f32
    %124 = vector.broadcast %cst_85 : f32 to vector<2x1x64xf32>
    %125 = tpu.concatenate %124, %123, %124 in 1 : vector<2x1x64xf32>, vector<2x8x64xf32>, vector<2x1x64xf32> -> vector<2x10x64xf32>
    %126 = vector.extract_strided_slice %125 {offsets = [0, 0, 0], sizes = [2, 8, 64], strides = [1, 1, 1]} : vector<2x10x64xf32> to vector<2x8x64xf32>
    %127 = vector.extract_strided_slice %125 {offsets = [0, 1, 0], sizes = [2, 8, 64], strides = [1, 1, 1]} : vector<2x10x64xf32> to vector<2x8x64xf32>
    %128 = vector.extract_strided_slice %125 {offsets = [0, 2, 0], sizes = [2, 8, 64], strides = [1, 1, 1]} : vector<2x10x64xf32> to vector<2x8x64xf32>
    %129 = tpu.concatenate %126, %127, %128 in 2 : vector<2x8x64xf32>, vector<2x8x64xf32>, vector<2x8x64xf32> -> vector<2x8x192xf32>
    %130 = vector.shape_cast %129 : vector<2x8x192xf32> to vector<16x192xf32>
    %131 = arith.truncf %130 : vector<16x192xf32> to vector<16x192xbf16>
    %c0_86 = arith.constant 0 : index
    %c0_87 = arith.constant 0 : index
    %132 = vector.load %arg18[%c0_86, %c0_87] : memref<192x64xbf16, #tpu.memory_space<vmem>>, vector<192x64xbf16>
    %cst_88 = arith.constant dense<0.000000e+00> : vector<16x64xf32>
    %133 = tpu.matmul %131, %132, %cst_88 {dimension_numbers = #tpu.dot_dimension_numbers<[1], [0], [0], [1], [0, 0, 1, 1], [], []>} : vector<16x192xbf16>, vector<192x64xbf16>, vector<16x64xf32> -> vector<16x64xf32>
    %c0_89 = arith.constant 0 : index
    %c0_90 = arith.constant 0 : index
    %134 = vector.load %arg19[%c0_89, %c0_90] : memref<1x64xf32, #tpu.memory_space<vmem>>, vector<1x64xf32>
    %135 = vector.broadcast %134 : vector<1x64xf32> to vector<16x64xf32>
    %136 = arith.addf %133, %135 : vector<16x64xf32>
    %137 = vector.shape_cast %107 : vector<2x8x32xf32> to vector<16x32xf32>
    %138 = arith.truncf %137 : vector<16x32xf32> to vector<16x32xbf16>
    %c0_91 = arith.constant 0 : index
    %c0_92 = arith.constant 0 : index
    %139 = vector.load %arg20[%c0_91, %c0_92] : memref<32x64xbf16, #tpu.memory_space<vmem>>, vector<32x64xbf16>
    %cst_93 = arith.constant dense<0.000000e+00> : vector<16x64xf32>
    %140 = tpu.matmul %138, %139, %cst_93 {dimension_numbers = #tpu.dot_dimension_numbers<[1], [0], [0], [1], [0, 0, 1, 1], [], []>} : vector<16x32xbf16>, vector<32x64xbf16>, vector<16x64xf32> -> vector<16x64xf32>
    %c0_94 = arith.constant 0 : index
    %c0_95 = arith.constant 0 : index
    %141 = vector.load %arg21[%c0_94, %c0_95] : memref<1x64xf32, #tpu.memory_space<vmem>>, vector<1x64xf32>
    %142 = vector.broadcast %141 : vector<1x64xf32> to vector<16x64xf32>
    %143 = arith.addf %140, %142 : vector<16x64xf32>
    %144 = arith.addf %136, %143 : vector<16x64xf32>
    %cst_96 = arith.constant 0.000000e+00 : f32
    %145 = vector.broadcast %cst_96 : f32 to vector<16x64xf32>
    %146 = arith.maximumf %144, %145 : vector<16x64xf32>
    %147 = vector.shape_cast %146 : vector<16x64xf32> to vector<2x8x64xf32>
    %cst_97 = arith.constant 0.000000e+00 : f32
    %148 = vector.broadcast %cst_97 : f32 to vector<2x1x64xf32>
    %149 = tpu.concatenate %148, %147, %148 in 1 : vector<2x1x64xf32>, vector<2x8x64xf32>, vector<2x1x64xf32> -> vector<2x10x64xf32>
    %150 = vector.extract_strided_slice %149 {offsets = [0, 0, 0], sizes = [2, 8, 64], strides = [1, 1, 1]} : vector<2x10x64xf32> to vector<2x8x64xf32>
    %151 = vector.extract_strided_slice %149 {offsets = [0, 1, 0], sizes = [2, 8, 64], strides = [1, 1, 1]} : vector<2x10x64xf32> to vector<2x8x64xf32>
    %152 = vector.extract_strided_slice %149 {offsets = [0, 2, 0], sizes = [2, 8, 64], strides = [1, 1, 1]} : vector<2x10x64xf32> to vector<2x8x64xf32>
    %153 = tpu.concatenate %150, %151, %152 in 2 : vector<2x8x64xf32>, vector<2x8x64xf32>, vector<2x8x64xf32> -> vector<2x8x192xf32>
    %154 = vector.shape_cast %153 : vector<2x8x192xf32> to vector<16x192xf32>
    %155 = arith.truncf %154 : vector<16x192xf32> to vector<16x192xbf16>
    %c0_98 = arith.constant 0 : index
    %c0_99 = arith.constant 0 : index
    %156 = vector.load %arg22[%c0_98, %c0_99] : memref<192x128xbf16, #tpu.memory_space<vmem>>, vector<192x128xbf16>
    %cst_100 = arith.constant dense<0.000000e+00> : vector<16x128xf32>
    %157 = tpu.matmul %155, %156, %cst_100 {dimension_numbers = #tpu.dot_dimension_numbers<[1], [0], [0], [1], [0, 0, 1, 1], [], []>} : vector<16x192xbf16>, vector<192x128xbf16>, vector<16x128xf32> -> vector<16x128xf32>
    %c0_101 = arith.constant 0 : index
    %c0_102 = arith.constant 0 : index
    %158 = vector.load %arg23[%c0_101, %c0_102] : memref<1x128xf32, #tpu.memory_space<vmem>>, vector<1x128xf32>
    %159 = vector.broadcast %158 : vector<1x128xf32> to vector<16x128xf32>
    %160 = arith.addf %157, %159 : vector<16x128xf32>
    %cst_103 = arith.constant 0.000000e+00 : f32
    %161 = vector.broadcast %cst_103 : f32 to vector<16x128xf32>
    %162 = arith.maximumf %160, %161 : vector<16x128xf32>
    %163 = vector.shape_cast %162 : vector<16x128xf32> to vector<2x8x128xf32>
    %cst_104 = arith.constant 0.000000e+00 : f32
    %164 = vector.broadcast %cst_104 : f32 to vector<2x1x128xf32>
    %165 = tpu.concatenate %164, %163, %164 in 1 : vector<2x1x128xf32>, vector<2x8x128xf32>, vector<2x1x128xf32> -> vector<2x10x128xf32>
    %166 = vector.extract_strided_slice %165 {offsets = [0, 0, 0], sizes = [2, 8, 128], strides = [1, 1, 1]} : vector<2x10x128xf32> to vector<2x8x128xf32>
    %167 = vector.extract_strided_slice %165 {offsets = [0, 1, 0], sizes = [2, 8, 128], strides = [1, 1, 1]} : vector<2x10x128xf32> to vector<2x8x128xf32>
    %168 = vector.extract_strided_slice %165 {offsets = [0, 2, 0], sizes = [2, 8, 128], strides = [1, 1, 1]} : vector<2x10x128xf32> to vector<2x8x128xf32>
    %169 = tpu.concatenate %166, %167, %168 in 2 : vector<2x8x128xf32>, vector<2x8x128xf32>, vector<2x8x128xf32> -> vector<2x8x384xf32>
    %170 = vector.shape_cast %169 : vector<2x8x384xf32> to vector<16x384xf32>
    %171 = arith.truncf %170 : vector<16x384xf32> to vector<16x384xbf16>
    %c0_105 = arith.constant 0 : index
    %c0_106 = arith.constant 0 : index
    %172 = vector.load %arg24[%c0_105, %c0_106] : memref<384x128xbf16, #tpu.memory_space<vmem>>, vector<384x128xbf16>
    %cst_107 = arith.constant dense<0.000000e+00> : vector<16x128xf32>
    %173 = tpu.matmul %171, %172, %cst_107 {dimension_numbers = #tpu.dot_dimension_numbers<[1], [0], [0], [1], [0, 0, 1, 1], [], []>} : vector<16x384xbf16>, vector<384x128xbf16>, vector<16x128xf32> -> vector<16x128xf32>
    %c0_108 = arith.constant 0 : index
    %c0_109 = arith.constant 0 : index
    %174 = vector.load %arg25[%c0_108, %c0_109] : memref<1x128xf32, #tpu.memory_space<vmem>>, vector<1x128xf32>
    %175 = vector.broadcast %174 : vector<1x128xf32> to vector<16x128xf32>
    %176 = arith.addf %173, %175 : vector<16x128xf32>
    %177 = vector.shape_cast %147 : vector<2x8x64xf32> to vector<16x64xf32>
    %178 = arith.truncf %177 : vector<16x64xf32> to vector<16x64xbf16>
    %c0_110 = arith.constant 0 : index
    %c0_111 = arith.constant 0 : index
    %179 = vector.load %arg26[%c0_110, %c0_111] : memref<64x128xbf16, #tpu.memory_space<vmem>>, vector<64x128xbf16>
    %cst_112 = arith.constant dense<0.000000e+00> : vector<16x128xf32>
    %180 = tpu.matmul %178, %179, %cst_112 {dimension_numbers = #tpu.dot_dimension_numbers<[1], [0], [0], [1], [0, 0, 1, 1], [], []>} : vector<16x64xbf16>, vector<64x128xbf16>, vector<16x128xf32> -> vector<16x128xf32>
    %c0_113 = arith.constant 0 : index
    %c0_114 = arith.constant 0 : index
    %181 = vector.load %arg27[%c0_113, %c0_114] : memref<1x128xf32, #tpu.memory_space<vmem>>, vector<1x128xf32>
    %182 = vector.broadcast %181 : vector<1x128xf32> to vector<16x128xf32>
    %183 = arith.addf %180, %182 : vector<16x128xf32>
    %184 = arith.addf %176, %183 : vector<16x128xf32>
    %cst_115 = arith.constant 0.000000e+00 : f32
    %185 = vector.broadcast %cst_115 : f32 to vector<16x128xf32>
    %186 = arith.maximumf %184, %185 : vector<16x128xf32>
    %187 = vector.shape_cast %186 : vector<16x128xf32> to vector<2x8x128xf32>
    %188 = vector.extract_strided_slice %187 {offsets = [0, 0, 0], sizes = [2, 7, 128], strides = [1, 1, 1]} : vector<2x8x128xf32> to vector<2x7x128xf32>
    %cst_116 = arith.constant dense<0.000000e+00> : vector<2x128xf32>
    %189 = vector.multi_reduction <add>, %188, %cst_116 [1] : vector<2x7x128xf32> to vector<2x128xf32>
    %cst_117 = arith.constant 0.142857149 : f32
    %190 = vector.broadcast %cst_117 : f32 to vector<2x128xf32>
    %191 = arith.mulf %189, %190 : vector<2x128xf32>
    %192 = vector.extract_strided_slice %187 {offsets = [0, 1, 0], sizes = [2, 7, 128], strides = [1, 1, 1]} : vector<2x8x128xf32> to vector<2x7x128xf32>
    %cst_118 = arith.constant dense<0.000000e+00> : vector<2x128xf32>
    %193 = vector.multi_reduction <add>, %192, %cst_118 [1] : vector<2x7x128xf32> to vector<2x128xf32>
    %cst_119 = arith.constant 0.142857149 : f32
    %194 = vector.broadcast %cst_119 : f32 to vector<2x128xf32>
    %195 = arith.mulf %193, %194 : vector<2x128xf32>
    %196 = tpu.concatenate %191, %195 in 1 : vector<2x128xf32>, vector<2x128xf32> -> vector<2x256xf32>
    %c0_120 = arith.constant 0 : index
    %c0_121 = arith.constant 0 : index
    %197 = vector.load %arg31[%c0_120, %c0_121] : memref<2x256xf32, #tpu.memory_space<vmem>>, vector<2x256xf32>
    tpu.vector_store %arg31[%c0_120, %c0_121], %196 {strides = array<i32>} : memref<2x256xf32, #tpu.memory_space<vmem>>, vector<2x256xf32>,
    %c0_122 = arith.constant 0 : index
    %c0_123 = arith.constant 0 : index
    %198 = vector.load %arg28[%c0_122, %c0_123] : memref<256x10xf32, #tpu.memory_space<vmem>>, vector<256x10xf32>
    %cst_124 = arith.constant dense<0.000000e+00> : vector<2x10xf32>
    %199 = tpu.matmul %196, %198, %cst_124 {dimension_numbers = #tpu.dot_dimension_numbers<[1], [0], [0], [1], [0, 0, 1, 1], [], []>} : vector<2x256xf32>, vector<256x10xf32>, vector<2x10xf32> -> vector<2x10xf32>
    %c0_125 = arith.constant 0 : index
    %c0_126 = arith.constant 0 : index
    %200 = vector.load %arg29[%c0_125, %c0_126] : memref<1x10xf32, #tpu.memory_space<vmem>>, vector<1x10xf32>
    %201 = vector.broadcast %200 : vector<1x10xf32> to vector<2x10xf32>
    %202 = arith.addf %199, %201 : vector<2x10xf32>
    %c0_127 = arith.constant 0 : index
    %c0_128 = arith.constant 0 : index
    %203 = vector.load %arg30[%c0_127, %c0_128] : memref<2x10xf32, #tpu.memory_space<vmem>>, vector<2x10xf32>
    tpu.vector_store %arg30[%c0_127, %c0_128], %202 {strides = array<i32>} : memref<2x10xf32, #tpu.memory_space<vmem>>, vector<2x10xf32>,
    return
  }
}

</mosaic_0001>

<bundles_post_ra>
// kernel: resnet_forward.1
= control target key start
LH: loop header
LB: loop body
LE: loop exit
PB: predicated region body
PF: predicated region fallthrough
CT: control target
= control target key end

     0   :  { %s2370_s6 = smov 1   ;;  %s2371_s10 = smov 2   ;;  %s2885_s0 = inlined_call_operand.smem [shape: u32[32], index: -1, kind: input, shape index: {}] }
   0x1   :  { %s2418_s5 = sld [smem:[%s2885_s0]]   ;;  %s2372_s14 = smov 3  }
   0x2   :  { %s2423_s9 = sld [smem:[%s2885_s0 + %s2370_s6]]   ;;  %s2373_s18 = smov 4  }
   0x3   :  { %s2428_s13 = sld [smem:[%s2885_s0 + %s2371_s10]]   ;;  %s2374_s22 = smov 5  }
   0x4   :  { %s2433_s17 = sld [smem:[%s2885_s0 + %s2372_s14]]   ;;  %s2375_s26 = smov 6  }
   0x5   :  { %s2438_s21 = sld [smem:[%s2885_s0 + %s2373_s18]]   ;;  %s2376_s30 = smov 7  }
   0x6   :  { %s2443_s25 = sld [smem:[%s2885_s0 + %s2374_s22]]   ;;  %s2377_s4 = smov 8  }
   0x7   :  { %s2448_s29 = sld [smem:[%s2885_s0 + %s2375_s26]]   ;;  %s2378_s10 = smov 9  }
   0x8   :  { %s2453_s3 = sld [smem:[%s2885_s0 + %s2376_s30]]   ;;  %s2379_s15 = smov 10  }
   0x9   :  { %s2458_s8 = sld [smem:[%s2885_s0 + %s2377_s4]]   ;;  %s2380_s20 = smov 11  }
   0xa   :  { %s2463_s14 = sld [smem:[%s2885_s0 + %s2378_s10]]   ;;  %s2381_s26 = smov 12  }
   0xb   :  { %s2468_s19 = sld [smem:[%s2885_s0 + %s2379_s15]]   ;;  %s2382_s1 = smov 13  }
   0xc   :  { %s2473_s24 = sld [smem:[%s2885_s0 + %s2380_s20]]   ;;  %s2383_s7 = smov 14  }
   0xd   :  { %s2478_s30 = sld [smem:[%s2885_s0 + %s2381_s26]]   ;;  %s2384_s15 = smov 15  }
   0xe   :  { %s2483_s6 = sld [smem:[%s2885_s0 + %s2382_s1]]   ;;  %s2385_s22 = smov 16  }
   0xf   :  { %s2488_s12 = sld [smem:[%s2885_s0 + %s2383_s7]]   ;;  %s2386_s28 = smov 17  }
  0x10   :  { %s2493_s20 = sld [smem:[%s2885_s0 + %s2384_s15]]   ;;  %s2387_s7 = smov 18  }
  0x11   :  { %s2498_s27 = sld [smem:[%s2885_s0 + %s2385_s22]]   ;;  %s2388_s15 = smov 19  }
  0x12   :  { %s2503_s4 = sld [smem:[%s2885_s0 + %s2386_s28]]   ;;  %s2389_s22 = smov 20  }
  0x13   :  { %s2390_s28 = smov 21  }
  0x14   :  { %2892 = sst [smem:[#allocation5_spill]] %s2483_s6 }
  0x15   :  { %s2508_s6 = sld [smem:[%s2885_s0 + %s2387_s7]]   ;;  %s2391_s7 = smov 22  }
  0x16   :  { %2893 = sst [smem:[#allocation6_spill]] %s2493_s20 }
  0x17   :  { %2894 = sst [smem:[#allocation7_spill]] %s2498_s27 }
  0x18   :  { %2895 = sst [smem:[#allocation8_spill]] %s2503_s4 }
  0x19   :  { %s2513_s20 = sld [smem:[%s2885_s0 + %s2388_s15]]   ;;  %s2392_s15 = smov 23  }
  0x1a   :  { %s2518_s27 = sld [smem:[%s2885_s0 + %s2389_s22]]   ;;  %s2393_s22 = smov 24  }
  0x1b   :  { %2896 = sst [smem:[#allocation9_spill]] %s2508_s6 }
  0x1c   :  { %s2523_s4 = sld [smem:[%s2885_s0 + %s2390_s28]]   ;;  %s2394_s28 = smov 25  }
  0x1d   :  { %s2528_s6 = sld [smem:[%s2885_s0 + %s2391_s7]]   ;;  %s2395_s7 = smov 26  }
  0x1f   :  { %2897 = sst [smem:[#allocation10_spill]] %s2513_s20 }
  0x20   :  { %2898 = sst [smem:[#allocation11_spill]] %s2518_s27 }
  0x21   :  { %s2533_s20 = sld [smem:[%s2885_s0 + %s2392_s15]]   ;;  %s2396_s15 = smov 27  }
  0x22   :  { %2899 = sst [smem:[#allocation12_spill]] %s2523_s4 }
  0x23   :  { %2900 = sst [smem:[#allocation13_spill]] %s2528_s6 }
  0x24   :  { %s2538_s27 = sld [smem:[%s2885_s0 + %s2393_s22]]   ;;  %s2397_s22 = smov 28  }
  0x25   :  { %s2543_s4 = sld [smem:[%s2885_s0 + %s2394_s28]]   ;;  %s2398_s28 = smov 29  }
  0x26   :  { %s2548_s6 = sld [smem:[%s2885_s0 + %s2395_s7]]   ;;  %s2399_s7 = smov 30  }
  0x27   :  { %2901 = sst [smem:[#allocation14_spill]] %s2533_s20 }
  0x28   :  { %s2553_s20 = sld [smem:[%s2885_s0 + %s2396_s15]]   ;;  %s2400_s15 = smov 31  }
  0x2a   :  { %2902 = sst [smem:[#allocation15_spill]] %s2538_s27 }
  0x2b   :  { %2903 = sst [smem:[#allocation16_spill]] %s2543_s4 }
  0x2c   :  { %2904 = sst [smem:[#allocation17_spill]] %s2548_s6 }
  0x2d   :  { %s2558_s27 = sld [smem:[%s2885_s0 + %s2397_s22]]  }
  0x2e   :  { %2905 = sst [smem:[#allocation18_spill]] %s2553_s20 }
  0x2f   :  { %s2563_s4 = sld [smem:[%s2885_s0 + %s2398_s28]]  }
  0x30   :  { %s2568_s6 = sld [smem:[%s2885_s0 + %s2399_s7]]  }
  0x31   :  { %s2573_s20 = sld [smem:[%s2885_s0 + %s2400_s15]]  }
  0x32   :  { %v133_v0 = vld [vmem:[%s2423_s9] sm:$0xff]  ;;  %s2401_s22 = smov 4   ;;  %s2402_s23 = smov 12  }
  0x33   :  { %v137_v1 = vld [vmem:[%s2433_s17] sm:$0xff]  ;;  %s2403_s0 = smov 20  }
  0x34   :  { %v141_v2 = vld [vmem:[%s2423_s9 + $0x1] sm:$0xff]  ;;  %v2211_v3 = vpack.i.bf16 %v137_v1, %v133_v0 }
  0x35   :  { %v2221_v4 = vpack.i.bf16 %v141_v2, %v137_v1  ;;  %v2580_v5 = vld [vmem:[%s2428_s13] sm:$0xff] }
  0x36   :  { %2212 = vrot.lane.b32.xlu0 %v2211_v3, %s2401_s22  ;;  %v139_v6 = vld [vmem:[%s2418_s5 + $0x1] sm:$0xff] }
  0x37   :  { %2222 = vrot.lane.b32.xlu1 %v2221_v4, %s2402_s23  ;;  %v143_v7 = vld [vmem:[%s2428_s13 + $0x1] sm:$0xff]  ;;  %v2216_v11 = vpack.i.bf16 %v139_v6, %v2580_v5 }
  0x38   :  { %v211_v8 = vld [vmem:[%s2433_s17 + $0x1] sm:$0xff]  ;;  %v2226_v12 = vpack.i.bf16 %v143_v7, %v139_v6 }
  0x39   :  { %v2231_v9 = vpack.i.bf16 %v211_v8, %v141_v2  ;;  %v213_v10 = vld [vmem:[%s2418_s5 + $0x2] sm:$0xff] }
  0x3b   :  { %2232 = vrot.lane.b32.xlu2 %v2231_v9, %s2403_s0 }
  0x3c   :  { %69 = vsyncpa [#allocation3], 0  ;;  %s2404_s26 = smov 8   ;;  %s2405_s28 = smov 16   ;;  %v134_v13 = vld [vmem:[%s2423_s9 + $0x10] sm:$0xff]  ;;  %v2236_v14 = vpack.i.bf16 %v213_v10, %v143_v7  ;;  %vm295_vm0 = vcmask 1045504  }
  0x3d   :  { %v138_v15 = vld [vmem:[%s2433_s17 + $0x10] sm:$0xff]  ;;  %s2406_s1 = smov 24   ;;  %v1770_v28 = vld [vmem:[%s2438_s21 + $0x8] sm:$0xf]  ;;  %v2094_v29 = vld [vmem:[%s2438_s21 + $0x8] sm:$0x30] }
  0x3e   :  { %2217 = vrot.lane.b32.xlu0 %v2216_v11, %s2404_s26  ;;  %v2591_v16 = vld [vmem:[%s2428_s13 + $0x10] sm:$0xff]  ;;  %v2241_v18 = vpack.i.bf16 %v138_v15, %v134_v13  ;;  %v1771_v30 = vor.u32 %v2094_v29, %v1770_v28  ;;  %v2093_v32 = vld [vmem:[%s2438_s21] sm:$0xff]  ;;  %vm193_vm1 = vcmask 31744   ;;  %vm196_vm2 = vcmask 64512   ;;  %s2908_s21 = sld [smem:[#allocation5_spill]]  ;;  %s1720_s11 = sshll.u32 %s2568_s6, 4  ;;  %s1721_s11 = int_to_ptr.hbm [resolvable:$true] %s1720_s11 }
  0x3f   :  { %2227 = vrot.lane.b32.xlu1 %v2226_v12, %s2405_s28  ;;  %v140_v17 = vld [vmem:[%s2418_s5 + $0x11] sm:$0xff]  ;;  %v131_v39 = vld [vmem:[%s2418_s5] sm:$0xff]  ;;  %vm199_vm3 = vcmask 97280   ;;  %vm202_vm4 = vcmask 130048   ;;  %vm205_vm5 = vcmask 162816   ;;  %vm208_vm6 = vcmask 195584  }
  0x40   :  { %v2246_v19 = vpack.i.bf16 %v140_v17, %v2591_v16  ;;  %v142_v20 = vld [vmem:[%s2423_s9 + $0x11] sm:$0xff]  ;;  %v297_v31 = vsel %vm295_vm0, %v1771_v30, 0  ;;  %vm288_vm7 = vcmask 228352   ;;  %vm328_vm8 = vcmask 1040384   ;;  %s2408_s9 = smov 64   ;;  %s2918_s2 = sld [smem:[#allocation16_spill]] }
  0x41   :  { %v2251_v21 = vpack.i.bf16 %v142_v20, %v138_v15  ;;  %v144_v22 = vld [vmem:[%s2428_s13 + $0x11] sm:$0xff]  ;;  %305 = vmatpush.bf16.msra.mxu0 %v297_v31  ;;  %vm349_vm9 = vcmask 1046528   ;;  %vm376_vm10 = vcmask 261120   ;;  %vm408_vm11 = vcmask 392192   ;;  %s2906_s13 = sld [smem:[#allocation11_spill]]  ;;  %vm2071_vm14 = vmneg %vm328_vm8  ;;  %s2356_s15 = sshra.s32 %s1721_s11, 4  ;;  %s2357_s15 = int_to_ptr.hbm [resolvable:$true] %s2356_s15 }
  0x42   :  { %v212_v23 = vld [vmem:[%s2433_s17 + $0x11] sm:$0xff]  ;;  %v2256_v24 = vpack.i.bf16 %v144_v22, %v140_v17  ;;  %vm650_vm12 = vcmask 523264   ;;  %s2907_s17 = sld [smem:[#allocation6_spill]]  ;;  %vm706_vm13 = vcmask 785408   ;;  %vm2073_vm15 = vmpackc.low %vm2071_vm14, %vm2071_vm14  ;;  %s2358_s16 = scalar_lea.hbm %s2357_s15, 2 }
  0x43   :  { %2237 = vrot.lane.b32.xlu2 %v2236_v14, %s2406_s1  ;;  %v2261_v25 = vpack.i.bf16 %v212_v23, %v142_v20  ;;  %v214_v26 = vld [vmem:[%s2418_s5 + $0x12] sm:$0xff]  ;;  %s2919_s7 = sld [smem:[#allocation18_spill]]  ;;  %p2359_p0 = scmp.ne.s32.totalorder %s2357_s15, %s2358_s16 }
  0x44   :  { %v2266_v27 = vpack.i.bf16 %v214_v26, %v144_v22  ;;  %v132_v6 = vld [vmem:[%s2418_s5 + $0x10] sm:$0xff]  ;;  %s2407_s5 = smov 32   ;;  %s2360_s18 = scalar_lea.hbm %s2568_s6, 2 }
  0x45   :  { %306 = vmatpush.bf16.msra.mxu0 %v2093_v32  ;;  %p2361_p1 = scmp.lt.s32.totalorder %s2357_s15, %s2568_s6  ;;  %p2362_p2 = scmp.lt.s32.totalorder %s2360_s18, %s2358_s16 }
  0x46   :  { %2242 = vrot.lane.b32.xlu0 %v2241_v18, %s2401_s22 }
  0x47   :  { %2247 = vrot.lane.b32.xlu1 %v2246_v19, %s2404_s26  ;;  %p2363_p3 = por %p2362_p2, %p2361_p1 }
  0x49   :  { %p2364_p4 = pnand %p2363_p3, %p2359_p0 }
  0x4b   :  { %2252 = vrot.lane.b32.xlu2 %v2251_v21, %s2402_s23 }
  0x4e   :  { %2257 = vrot.lane.b32.xlu0 %v2256_v24, %s2405_s28 }
  0x4f   :  { %2262 = vrot.lane.b32.xlu1 %v2261_v25, %s2403_s0 }
  0x53   :  { %2267 = vrot.lane.b32.xlu2 %v2266_v27, %s2406_s1 }
  0x95   :  { %v2233_v33 = vpop.permute.xlu2 %2232 }
  0x96   :  { %v2235_v40 = vunpack.i.h.bf16 %v2233_v33  ;;  %v2234_v56 = vunpack.i.l.bf16 %v2233_v33 }
  0x9d   :  { %v2238_v36 = vpop.permute.xlu2 %2237 }
  0x9e   :  { %v2240_v53 = vunpack.i.h.bf16 %v2238_v36  ;;  %v2239_v54 = vunpack.i.l.bf16 %v2238_v36 }
  0xa5   :  { %v2253_v55 = vpop.permute.xlu2 %2252 }
  0xa6   :  { %v2255_v12 = vunpack.i.h.bf16 %v2253_v55  ;;  %v2254_v13 = vunpack.i.l.bf16 %v2253_v55 }
  0xa8   :  { %v2213_v34 = vpop.permute.xlu0 %2212 }
  0xa9   :  { %v2223_v35 = vpop.permute.xlu1 %2222  ;;  %v2215_v37 = vunpack.i.h.bf16 %v2213_v34  ;;  %v2214_v38 = vunpack.i.l.bf16 %v2213_v34  ;;  %v2331_v34 = vld [vmem:[%s2443_s25] ss:$0 sm:$0xff]  ;;  %s2909_s25 = sld [smem:[#allocation7_spill]] }
  0xaa   :  { %v2225_v49 = vunpack.i.h.bf16 %v2223_v35  ;;  %v2224_v50 = vunpack.i.l.bf16 %v2223_v35 }
  0xab   :  { %v255_v47 = vsel %vm193_vm1, %v2580_v5, %v2215_v37  ;;  %v194_v48 = vsel %vm193_vm1, %v131_v39, %v2214_v38  ;;  %v2097_v37 = vld [vmem:[%s2448_s29 + $0x10] sm:$0xff]  ;;  %v2096_v38 = vld [vmem:[%s2448_s29 + $0x8] sm:$0xff] }
  0xac   :  { %417 = vmatpush.bf16.msra.mxu3 %v2097_v37 }
  0xad   :  { %v2268_v11 = vpop.permute.xlu2 %2267 }
  0xae   :  { %v2270_v19 = vunpack.i.h.bf16 %v2268_v11  ;;  %v2269_v20 = vunpack.i.l.bf16 %v2268_v11 }
  0xb0   :  { %v2218_v41 = vpop.permute.xlu0 %2217  ;;  %418 = vmatpush.bf16.msra.mxu3 %v2096_v38 }
  0xb1   :  { %v2228_v42 = vpop.permute.xlu1 %2227  ;;  %v2220_v43 = vunpack.i.h.bf16 %v2218_v41  ;;  %v2219_v44 = vunpack.i.l.bf16 %v2218_v41 }
  0xb2   :  { %v2230_v45 = vunpack.i.h.bf16 %v2228_v42  ;;  %v2229_v46 = vunpack.i.l.bf16 %v2228_v42 }
  0xb3   :  { %v197_v51 = vsel %vm196_vm2, %v194_v48, %v2219_v44  ;;  %v257_v52 = vsel %vm196_vm2, %v255_v47, %v2220_v43 }
  0xb4   :  { %v200_v57 = vsel %vm199_vm3, %v197_v51, %v2224_v50  ;;  %v259_v58 = vsel %vm199_vm3, %v257_v52, %v2225_v49 }
  0xb5   :  { %v203_v59 = vsel %vm202_vm4, %v200_v57, %v2229_v46  ;;  %v261_v60 = vsel %vm202_vm4, %v259_v58, %v2230_v45 }
  0xb6   :  { %v206_v61 = vsel %vm205_vm5, %v203_v59, %v2234_v56  ;;  %v263_v62 = vsel %vm205_vm5, %v261_v60, %v2235_v40 }
  0xb7   :  { %v209_v63 = vsel %vm208_vm6, %v206_v61, %v2239_v54  ;;  %v265_v0 = vsel %vm208_vm6, %v263_v62, %v2240_v53 }
  0xb8   :  { %v2243_v1 = vpop.permute.xlu0 %2242  ;;  %v267_v3 = vpack.c.bf16 %v265_v0, %v209_v63 }
  0xb9   :  { %v2248_v2 = vpop.permute.xlu1 %2247  ;;  %v2245_v4 = vunpack.i.h.bf16 %v2243_v1  ;;  %v2244_v5 = vunpack.i.l.bf16 %v2243_v1 }
  0xba   :  { %1772 = vmatmul.msk.bf16.vlgmr.msra.gmra.mxu0 %vm288_vm7, %v267_v3  ;;  %v2250_v7 = vunpack.i.h.bf16 %v2248_v2  ;;  %v2249_v8 = vunpack.i.l.bf16 %v2248_v2 }
  0xbb   :  { %v256_v9 = vsel %vm193_vm1, %v2591_v16, %v2245_v4  ;;  %v195_v10 = vsel %vm193_vm1, %v132_v6, %v2244_v5  ;;  %vm1631_vm1 = vcmask 1041408  }
  0xbc   :  { %v198_v14 = vsel %vm196_vm2, %v195_v10, %v2249_v8  ;;  %v258_v15 = vsel %vm196_vm2, %v256_v9, %v2250_v7  ;;  %vm1711_vm2 = vcmask 74752  }
  0xbd   :  { %v201_v16 = vsel %vm199_vm3, %v198_v14, %v2254_v13  ;;  %v260_v25 = vsel %vm199_vm3, %v258_v15, %v2255_v12  ;;  %v2095_v12 = vld [vmem:[%s2448_s29] sm:$0xff]  ;;  %s2910_s29 = sld [smem:[#allocation9_spill]] }
  0xbe   :  { %419 = vmatpush.bf16.msra.mxu3 %v2095_v12 }
  0xc0   :  { %v2258_v17 = vpop.permute.xlu0 %2257 }
  0xc1   :  { %v2263_v18 = vpop.permute.xlu1 %2262  ;;  %v2260_v21 = vunpack.i.h.bf16 %v2258_v17  ;;  %v2259_v22 = vunpack.i.l.bf16 %v2258_v17 }
  0xc2   :  { %v2265_v23 = vunpack.i.h.bf16 %v2263_v18  ;;  %v2264_v24 = vunpack.i.l.bf16 %v2263_v18 }
  0xc3   :  { %v204_v26 = vsel %vm202_vm4, %v201_v16, %v2259_v22  ;;  %v262_v27 = vsel %vm202_vm4, %v260_v25, %v2260_v21  ;;  %v2332_v16 = vld [vmem:[%s2453_s3] ss:$0 sm:$0xff]  ;;  %s2911_s3 = sld [smem:[#allocation8_spill]] }
  0xc4   :  { %v207_v28 = vsel %vm205_vm5, %v204_v26, %v2264_v24  ;;  %v264_v29 = vsel %vm205_vm5, %v262_v27, %v2265_v23 }
  0xc5   :  { %v210_v30 = vsel %vm208_vm6, %v207_v28, %v2269_v20  ;;  %v266_v31 = vsel %vm208_vm6, %v264_v29, %v2270_v19 }
  0xc6   :  { %v268_v32 = vpack.c.bf16 %v266_v31, %v210_v30 }
  0xca   :  { %1773 = vmatmul.msk.bf16.gmra.mxu0 %vm288_vm7, %v268_v32 }
 0x137   :  { %v308_v33 = vpop.f32.mrf.mxu0 }
 0x138   :  { %v309_v40 = vadd.f32 %v2331_v34, %v308_v33 }
 0x13a   :  { %v318_v43 = vmax.f32 %v309_v40, 0.0 }
 0x13f   :  { %v310_v35 = vpop.f32.mrf.mxu0 }
 0x140   :  { %v311_v36 = vadd.f32 %v2331_v34, %v310_v35 }
 0x142   :  { %v319_v39 = vmax.f32 %v311_v36, 0.0 }
 0x144   :  { %v324_v42 = vrot.slane %v319_v39, 7  ;;  %v331_v44 = vmax.f32 %v318_v43, %v319_v39 }
 0x146   :  { %v329_v45 = vsel %vm328_vm8, -inf, %v324_v42 }
 0x147   :  { %v313_v41 = vpop.f32.mrf.mxu0  ;;  %v2639_v47 = vmax.f32 %v331_v44, %v329_v45 }
 0x148   :  { %v314_v46 = vadd.f32 %v2331_v34, %v313_v41 }
 0x149   :  { %v337_v52 = vrot.slane %v2639_v47, 7 }
 0x14a   :  { %v320_v50 = vmax.f32 %v314_v46, 0.0 }
 0x14b   :  { %v341_v56 = vsel %vm328_vm8, 0.0, %v337_v52  ;;  %v343_v57 = vsel %vm328_vm8, %v337_v52, 0.0  ;;  %v2100_v52 = vld [vmem:[%s2458_s8 + $0x10] sm:$0xff] }
 0x14c   :  { %v362_v60 = vrot.slane %v341_v56, 2  ;;  %v363_v61 = vrot.slane %v343_v57, 2  ;;  %v350_v62 = vrot.slane %v341_v56, 1  ;;  %v351_v63 = vrot.slane %v343_v57, 1  ;;  %507 = vmatpush.bf16.msra.mxu2 %v2100_v52 }
 0x14e   :  { %v364_v6 = vsel %vm295_vm0, %v362_v60, %v363_v61  ;;  %v352_v8 = vsel %vm349_vm9, %v350_v62, %v351_v63 }
 0x14f   :  { %v315_v48 = vpop.f32.mrf.mxu0 }
 0x150   :  { %v316_v49 = vadd.f32 %v2331_v34, %v315_v48 }
 0x152   :  { %v321_v51 = vmax.f32 %v316_v49, 0.0 }
 0x154   :  { %v325_v53 = vrot.slane %v321_v51, 7  ;;  %v332_v54 = vmax.f32 %v320_v50, %v321_v51 }
 0x156   :  { %v330_v55 = vsel %vm328_vm8, -inf, %v325_v53  ;;  %v2099_v53 = vld [vmem:[%s2458_s8 + $0x8] sm:$0xff] }
 0x157   :  { %v2645_v58 = vmax.f32 %v332_v54, %v330_v55  ;;  %508 = vmatpush.bf16.msra.mxu2 %v2099_v53  ;;  %v2098_v54 = vld [vmem:[%s2458_s8] sm:$0xff]  ;;  %s2912_s8 = sld [smem:[#allocation13_spill]] }
 0x159   :  { %v338_v59 = vrot.slane %v2645_v58, 7 }
 0x15b   :  { %v342_v0 = vsel %vm328_vm8, 0.0, %v338_v59  ;;  %v344_v1 = vsel %vm328_vm8, %v338_v59, 0.0  ;;  %509 = vmatpush.bf16.msra.mxu2 %v2098_v54 }
 0x15c   :  { %v365_v2 = vrot.slane %v342_v0, 2  ;;  %v366_v3 = vrot.slane %v344_v1, 2  ;;  %v353_v4 = vrot.slane %v342_v0, 1  ;;  %v354_v5 = vrot.slane %v344_v1, 1 }
 0x15e   :  { %v367_v7 = vsel %vm295_vm0, %v365_v2, %v366_v3  ;;  %v355_v9 = vsel %vm349_vm9, %v353_v4, %v354_v5  ;;  %v2110_v3 = vld [vmem:[%s2488_s12] sm:$0xff]  ;;  %s2917_s12 = sld [smem:[#allocation14_spill]] }
 0x15f   :  { %v2276_v10 = vpack.i.bf16 %v367_v7, %v364_v6  ;;  %v2271_v11 = vpack.i.bf16 %v355_v9, %v352_v8  ;;  %747 = vmatpush.bf16.msrb.mxu2 %v2110_v3  ;;  %v2333_v4 = vld [vmem:[%s2463_s14] ss:$0 sm:$0xff]  ;;  %s2913_s14 = sld [smem:[#allocation10_spill]] }
 0x161   :  { %2277 = vrot.lane.b32.xlu1 %v2276_v10, %s2407_s5  ;;  %2272 = vrot.lane.b32.xlu0 %v2271_v11, %s2405_s28 }
 0x1d3   :  { %v2278_v13 = vpop.permute.xlu1 %2277  ;;  %v2273_v14 = vpop.permute.xlu0 %2272 }
 0x1d4   :  { %v2280_v15 = vunpack.i.h.bf16 %v2278_v13  ;;  %v2279_v17 = vunpack.i.l.bf16 %v2278_v13  ;;  %v2275_v18 = vunpack.i.h.bf16 %v2273_v14  ;;  %v2274_v19 = vunpack.i.l.bf16 %v2273_v14 }
 0x1d6   :  { %v375_v20 = vsel %vm202_vm4, %v342_v0, %v2275_v18  ;;  %v374_v21 = vsel %vm202_vm4, %v341_v56, %v2274_v19 }
 0x1d7   :  { %v377_v22 = vsel %vm376_vm10, %v374_v21, %v2279_v17  ;;  %v378_v23 = vsel %vm376_vm10, %v375_v20, %v2280_v15 }
 0x1d8   :  { %v379_v24 = vpack.c.bf16 %v378_v23, %v377_v22 }
 0x1da   :  { %1786 = vmatmul.msk.bf16.vlgmr.msra.gmra.mxu3 %vm408_vm11, %v379_v24 }
 0x25d   :  { %v421_v25 = vpop.f32.mrf.mxu3 }
 0x25e   :  { %v422_v26 = vadd.f32 %v2332_v16, %v421_v25 }
 0x260   :  { %v426_v27 = vmax.f32 %v422_v26, 0.0 }
 0x262   :  { %v430_v28 = vrot.slane %v426_v27, 7 }
 0x264   :  { %v434_v31 = vsel %vm328_vm8, 0.0, %v430_v28  ;;  %v436_v32 = vsel %vm328_vm8, %v430_v28, 0.0 }
 0x265   :  { %v423_v29 = vpop.f32.mrf.mxu3  ;;  %v442_v35 = vrot.slane %v434_v31, 1  ;;  %v443_v36 = vrot.slane %v436_v32, 1  ;;  %v454_v37 = vrot.slane %v434_v31, 2  ;;  %v455_v38 = vrot.slane %v436_v32, 2  ;;  %v2103_v32 = vld [vmem:[%s2468_s19 + $0x10] sm:$0xff] }
 0x266   :  { %v424_v30 = vadd.f32 %v2332_v16, %v423_v29  ;;  %599 = vmatpush.bf16.msrb.mxu3 %v2103_v32 }
 0x267   :  { %v456_v45 = vsel %vm295_vm0, %v454_v37, %v455_v38  ;;  %v444_v48 = vsel %vm349_vm9, %v442_v35, %v443_v36 }
 0x268   :  { %v427_v33 = vmax.f32 %v424_v30, 0.0 }
 0x26a   :  { %v431_v34 = vrot.slane %v427_v33, 7  ;;  %v2102_v33 = vld [vmem:[%s2468_s19 + $0x8] sm:$0xff] }
 0x26b   :  { %600 = vmatpush.bf16.msrb.mxu3 %v2102_v33 }
 0x26c   :  { %v435_v39 = vsel %vm328_vm8, 0.0, %v431_v34  ;;  %v437_v40 = vsel %vm328_vm8, %v431_v34, 0.0  ;;  %v2101_v34 = vld [vmem:[%s2468_s19] sm:$0xff]  ;;  %s2914_s19 = sld [smem:[#allocation12_spill]] }
 0x26d   :  { %v445_v41 = vrot.slane %v435_v39, 1  ;;  %v446_v42 = vrot.slane %v437_v40, 1  ;;  %v457_v43 = vrot.slane %v435_v39, 2  ;;  %v458_v44 = vrot.slane %v437_v40, 2 }
 0x26f   :  { %v459_v46 = vsel %vm295_vm0, %v457_v43, %v458_v44  ;;  %v447_v49 = vsel %vm349_vm9, %v445_v41, %v446_v42  ;;  %601 = vmatpush.bf16.msrb.mxu3 %v2101_v34 }
 0x270   :  { %v2286_v50 = vpack.i.bf16 %v459_v46, %v456_v45  ;;  %v2281_v51 = vpack.i.bf16 %v447_v49, %v444_v48  ;;  %v2109_v46 = vld [vmem:[%s2478_s30 + $0x28] sm:$0xff]  ;;  %v2108_v48 = vld [vmem:[%s2478_s30 + $0x20] sm:$0xff]  ;;  %v2107_v49 = vld [vmem:[%s2478_s30 + $0x18] sm:$0xff] }
 0x271   :  { %712 = vmatpush.bf16.msra.mxu1 %v2109_v46 }
 0x272   :  { %2287 = vrot.lane.b32.xlu0 %v2286_v50, %s2407_s5  ;;  %2282 = vrot.lane.b32.xlu2 %v2281_v51, %s2405_s28  ;;  %v2335_v50 = vld [vmem:[%s2473_s24] ss:$0 sm:$0xff]  ;;  %v2106_v51 = vld [vmem:[%s2478_s30 + $0x10] sm:$0xff]  ;;  %s2915_s24 = sld [smem:[#allocation17_spill]] }
 0x275   :  { %713 = vmatpush.bf16.msra.mxu1 %v2108_v48 }
 0x279   :  { %714 = vmatpush.bf16.msra.mxu1 %v2107_v49 }
 0x27d   :  { %715 = vmatpush.bf16.msra.mxu1 %v2106_v51 }
 0x2cc   :  { %v2283_v55 = vpop.permute.xlu2 %2282 }
 0x2cd   :  { %v2285_v56 = vunpack.i.h.bf16 %v2283_v55  ;;  %v2284_v57 = vunpack.i.l.bf16 %v2283_v55  ;;  %v2105_v55 = vld [vmem:[%s2478_s30 + $0x8] sm:$0xff] }
 0x2ce   :  { %716 = vmatpush.bf16.msra.mxu1 %v2105_v55 }
 0x2cf   :  { %v467_v62 = vsel %vm202_vm4, %v435_v39, %v2285_v56  ;;  %v466_v63 = vsel %vm202_vm4, %v434_v31, %v2284_v57 }
 0x2e4   :  { %v2288_v59 = vpop.permute.xlu0 %2287 }
 0x2e5   :  { %v2290_v60 = vunpack.i.h.bf16 %v2288_v59  ;;  %v2289_v61 = vunpack.i.l.bf16 %v2288_v59 }
 0x2e7   :  { %v468_v0 = vsel %vm376_vm10, %v466_v63, %v2289_v61  ;;  %v469_v1 = vsel %vm376_vm10, %v467_v62, %v2290_v60 }
 0x2e8   :  { %v470_v2 = vpack.c.bf16 %v469_v1, %v468_v0 }
 0x2ea   :  { %1799 = vmatmul.msk.bf16.vlgmr.msra.gmra.mxu2 %vm408_vm11, %v470_v2 }
 0x36d   :  { %v511_v5 = vpop.f32.mrf.mxu2 }
 0x36e   :  { %v512_v6 = vadd.f32 %v2333_v4, %v511_v5 }
 0x370   :  { %v516_v7 = vadd.f32 %v512_v6, %v2639_v47 }
 0x372   :  { %v518_v8 = vmax.f32 %v516_v7, 0.0 }
 0x374   :  { %v522_v10 = vrot.slane %v518_v8, 7 }
 0x375   :  { %v513_v9 = vpop.f32.mrf.mxu2 }
 0x376   :  { %v514_v11 = vadd.f32 %v2333_v4, %v513_v9  ;;  %v526_v13 = vsel %vm328_vm8, 0.0, %v522_v10  ;;  %v528_v14 = vsel %vm328_vm8, %v522_v10, 0.0 }
 0x377   :  { %v534_v19 = vrot.slane %v526_v13, 1  ;;  %v535_v20 = vrot.slane %v528_v14, 1  ;;  %v546_v21 = vrot.slane %v526_v13, 2  ;;  %v547_v22 = vrot.slane %v528_v14, 2 }
 0x378   :  { %v517_v12 = vadd.f32 %v514_v11, %v2645_v58 }
 0x379   :  { %v548_v26 = vsel %vm295_vm0, %v546_v21, %v547_v22  ;;  %v536_v28 = vsel %vm349_vm9, %v534_v19, %v535_v20 }
 0x37a   :  { %v519_v15 = vmax.f32 %v517_v12, 0.0 }
 0x37c   :  { %v523_v17 = vrot.slane %v519_v15, 7  ;;  %v724_v18 = vpack.c.bf16 %v519_v15, %v518_v8 }
 0x37e   :  { %v527_v47 = vsel %vm328_vm8, 0.0, %v523_v17  ;;  %v529_v23 = vsel %vm328_vm8, %v523_v17, 0.0  ;;  %1842 = vmatmul.msk.bf16.vlgmr.msrb.gmra.mxu2 %vm202_vm4, %v724_v18  ;;  %v2104_v17 = vld [vmem:[%s2478_s30] sm:$0xff]  ;;  %s2916_s30 = sld [smem:[#allocation15_spill]] }
 0x37f   :  { %v537_v58 = vrot.slane %v527_v47, 1  ;;  %v538_v24 = vrot.slane %v529_v23, 1  ;;  %v549_v16 = vrot.slane %v527_v47, 2  ;;  %v550_v25 = vrot.slane %v529_v23, 2  ;;  %717 = vmatpush.bf16.msra.mxu1 %v2104_v17 }
 0x381   :  { %v551_v27 = vsel %vm295_vm0, %v549_v16, %v550_v25  ;;  %v539_v29 = vsel %vm349_vm9, %v537_v58, %v538_v24 }
 0x382   :  { %v2296_v30 = vpack.i.bf16 %v551_v27, %v548_v26  ;;  %v2291_v31 = vpack.i.bf16 %v539_v29, %v536_v28  ;;  %v2130_v26 = vld [vmem:[%s2906_s13 + $0x8] sm:$0xff]  ;;  %v2129_v27 = vld [vmem:[%s2906_s13] sm:$0xff] }
 0x383   :  { %1071 = vmatpush.bf16.msrb.mxu1 %v2130_v26  ;;  %v2334_v29 = vld [vmem:[%s2907_s17] ss:$0 sm:$0xff] }
 0x384   :  { %2297 = vrot.lane.b32.xlu2 %v2296_v30, %s2407_s5  ;;  %2292 = vrot.lane.b32.xlu1 %v2291_v31, %s2405_s28  ;;  %v2336_v30 = vld [vmem:[%s2908_s21] ss:$0 sm:$0xff] }
 0x387   :  { %1072 = vmatpush.bf16.msrb.mxu1 %v2129_v27 }
 0x3de   :  { %v2298_v35 = vpop.permute.xlu2 %2297 }
 0x3df   :  { %v2300_v39 = vunpack.i.h.bf16 %v2298_v35  ;;  %v2299_v40 = vunpack.i.l.bf16 %v2298_v35 }
 0x3f6   :  { %v2293_v36 = vpop.permute.xlu1 %2292 }
 0x3f7   :  { %v2295_v37 = vunpack.i.h.bf16 %v2293_v36  ;;  %v2294_v38 = vunpack.i.l.bf16 %v2293_v36 }
 0x3f9   :  { %v559_v41 = vsel %vm202_vm4, %v527_v47, %v2295_v37  ;;  %v558_v42 = vsel %vm202_vm4, %v526_v13, %v2294_v38 }
 0x3fa   :  { %v560_v43 = vsel %vm376_vm10, %v558_v42, %v2299_v40  ;;  %v561_v44 = vsel %vm376_vm10, %v559_v41, %v2300_v39 }
 0x3fb   :  { %v562_v45 = vpack.c.bf16 %v561_v44, %v560_v43 }
 0x3fd   :  { %1812 = vmatmul.msk.bf16.vlgmr.msrb.gmra.mxu3 %vm408_vm11, %v562_v45 }
 0x401   :  { %v749_v28 = vpop.f32.mrf.mxu2 }
 0x402   :  { %v750_v32 = vadd.f32 %v2334_v29, %v749_v28  ;;  %v2120_v28 = vld [vmem:[%s2910_s29 + $0x18] sm:$0xff] }
 0x409   :  { %v751_v36 = vpop.f32.mrf.mxu2 }
 0x40a   :  { %v752_v38 = vadd.f32 %v2334_v29, %v751_v36  ;;  %v2118_v36 = vld [vmem:[%s2910_s29 + $0x8] sm:$0xff] }
 0x480   :  { %v603_v52 = vpop.f32.mrf.mxu3 }
 0x481   :  { %v604_v53 = vadd.f32 %v2335_v50, %v603_v52 }
 0x483   :  { %v608_v54 = vmax.f32 %v604_v53, 0.0 }
 0x485   :  { %v612_v56 = vrot.slane %v608_v54, 7 }
 0x487   :  { %v616_v60 = vsel %vm328_vm8, 0.0, %v612_v56  ;;  %v618_v61 = vsel %vm328_vm8, %v612_v56, 0.0 }
 0x488   :  { %v605_v57 = vpop.f32.mrf.mxu3  ;;  %v624_v0 = vrot.slane %v616_v60, 1  ;;  %v625_v1 = vrot.slane %v618_v61, 1  ;;  %v636_v2 = vrot.slane %v616_v60, 2  ;;  %v637_v3 = vrot.slane %v618_v61, 2 }
 0x489   :  { %v606_v59 = vadd.f32 %v2335_v50, %v605_v57 }
 0x48a   :  { %v638_v10 = vsel %vm295_vm0, %v636_v2, %v637_v3  ;;  %v626_v12 = vsel %vm349_vm9, %v624_v0, %v625_v1  ;;  %v2116_v1 = vld [vmem:[%s2909_s25 + $0x28] sm:$0xff]  ;;  %v2115_v2 = vld [vmem:[%s2909_s25 + $0x20] sm:$0xff]  ;;  %v2114_v3 = vld [vmem:[%s2909_s25 + $0x18] sm:$0xff] }
 0x48b   :  { %v609_v62 = vmax.f32 %v606_v59, 0.0  ;;  %858 = vmatpush.bf16.msra.mxu3 %v2116_v1  ;;  %v2140_v1 = vld [vmem:[%s2912_s8 + $0x48] sm:$0xff] }
 0x48d   :  { %v613_v63 = vrot.slane %v609_v62, 7 }
 0x48f   :  { %v617_v4 = vsel %vm328_vm8, 0.0, %v613_v63  ;;  %v619_v5 = vsel %vm328_vm8, %v613_v63, 0.0  ;;  %859 = vmatpush.bf16.msra.mxu3 %v2115_v2  ;;  %v2139_v2 = vld [vmem:[%s2912_s8 + $0x40] sm:$0xff] }
 0x490   :  { %v627_v6 = vrot.slane %v617_v4, 1  ;;  %v628_v7 = vrot.slane %v619_v5, 1  ;;  %v639_v8 = vrot.slane %v617_v4, 2  ;;  %v640_v9 = vrot.slane %v619_v5, 2  ;;  %v2112_v5 = vld [vmem:[%s2909_s25 + $0x8] sm:$0xff] }
 0x492   :  { %v641_v11 = vsel %vm295_vm0, %v639_v8, %v640_v9  ;;  %v629_v13 = vsel %vm349_vm9, %v627_v6, %v628_v7  ;;  %v2111_v6 = vld [vmem:[%s2909_s25] sm:$0xff] }
 0x493   :  { %v2306_v14 = vpack.i.bf16 %v641_v11, %v638_v10  ;;  %v2301_v15 = vpack.i.bf16 %v629_v13, %v626_v12  ;;  %860 = vmatpush.bf16.msra.mxu3 %v2114_v3  ;;  %v2138_v3 = vld [vmem:[%s2912_s8 + $0x38] sm:$0xff] }
 0x495   :  { %2307 = vrot.lane.b32.xlu1 %v2306_v14, %s2408_s9  ;;  %2302 = vrot.lane.b32.xlu0 %v2301_v15, %s2407_s5 }
 0x507   :  { %v2308_v18 = vpop.permute.xlu1 %2307  ;;  %v2303_v19 = vpop.permute.xlu0 %2302 }
 0x508   :  { %v2310_v20 = vunpack.i.h.bf16 %v2308_v18  ;;  %v2309_v21 = vunpack.i.l.bf16 %v2308_v18  ;;  %v2305_v22 = vunpack.i.h.bf16 %v2303_v19  ;;  %v2304_v47 = vunpack.i.l.bf16 %v2303_v19  ;;  %v2128_v19 = vld [vmem:[%s2910_s29 + $0x58] sm:$0xff] }
 0x509   :  { %1031 = vmatpush.bf16.msra.mxu2 %v2128_v19 }
 0x50a   :  { %v649_v23 = vsel %vm376_vm10, %v617_v4, %v2305_v22  ;;  %v648_v58 = vsel %vm376_vm10, %v616_v60, %v2304_v47  ;;  %v2113_v4 = vld [vmem:[%s2909_s25 + $0x10] sm:$0xff]  ;;  %v2125_v22 = vld [vmem:[%s2910_s29 + $0x40] sm:$0xff]  ;;  %v2124_v47 = vld [vmem:[%s2910_s29 + $0x38] sm:$0xff] }
 0x50b   :  { %v651_v24 = vsel %vm650_vm12, %v648_v58, %v2309_v21  ;;  %v652_v16 = vsel %vm650_vm12, %v649_v23, %v2310_v20  ;;  %861 = vmatpush.bf16.msra.mxu3 %v2113_v4  ;;  %v2127_v20 = vld [vmem:[%s2910_s29 + $0x50] sm:$0xff]  ;;  %v2126_v21 = vld [vmem:[%s2910_s29 + $0x48] sm:$0xff]  ;;  %1013 = vmatpush.bf16.msrb.mxu0 %v2124_v47 }
 0x50c   :  { %v653_v25 = vpack.c.bf16 %v652_v16, %v651_v24  ;;  %v2123_v23 = vld [vmem:[%s2910_s29 + $0x30] sm:$0xff]  ;;  %v2122_v58 = vld [vmem:[%s2910_s29 + $0x28] sm:$0xff]  ;;  %v2338_v24 = vld [vmem:[%s2911_s3] ss:$0 sm:$0xff] }
 0x50d   :  { %1032 = vmatpush.bf16.msra.mxu2 %v2127_v20  ;;  %v2121_v16 = vld [vmem:[%s2910_s29 + $0x20] sm:$0xff]  ;;  %v2137_v4 = vld [vmem:[%s2912_s8 + $0x30] sm:$0xff] }
 0x50e   :  { %1837 = vmatmul.msk.bf16.vlgmr.msra.gmra.mxu1 %vm706_vm13, %v653_v25 }
 0x50f   :  { %862 = vmatpush.bf16.msra.mxu3 %v2112_v5  ;;  %1014 = vmatpush.bf16.msrb.mxu0 %v2123_v23  ;;  %v2339_v5 = vld [vmem:[%s2913_s14] ss:$0 sm:$0xff] }
 0x511   :  { %1033 = vmatpush.bf16.msra.mxu2 %v2126_v21 }
 0x513   :  { %863 = vmatpush.bf16.msra.mxu3 %v2111_v6  ;;  %1015 = vmatpush.bf16.msrb.mxu0 %v2122_v58 }
 0x515   :  { %1034 = vmatpush.bf16.msra.mxu2 %v2125_v22 }
 0x517   :  { %1016 = vmatpush.bf16.msrb.mxu0 %v2121_v16  ;;  %1224 = vmatpush.bf16.msrb.mxu3 %v2138_v3  ;;  %v2147_v3 = vld [vmem:[%s2916_s30 + $0x20] sm:$0xff] }
 0x51b   :  { %1017 = vmatpush.bf16.msrb.mxu0 %v2120_v28  ;;  %1225 = vmatpush.bf16.msrb.mxu3 %v2137_v4  ;;  %v2132_v28 = vld [vmem:[%s2912_s8 + $0x8] sm:$0xff] }
 0x51c   :  { %v2156_v4 = vld [vmem:[%s2916_s30 + $0x68] sm:$0xff] }
 0x58b   :  { %v719_v31 = vpop.f32.mrf.mxu1 }
 0x58c   :  { %v720_v33 = vadd.f32 %v2336_v30, %v719_v31 }
 0x58e   :  { %v754_v34 = vadd.f32 %v750_v32, %v720_v33 }
 0x590   :  { %v756_v35 = vmax.f32 %v754_v34, 0.0 }
 0x592   :  { %v760_v39 = vrot.slane %v756_v35, 7 }
 0x593   :  { %v721_v37 = vpop.f32.mrf.mxu1 }
 0x594   :  { %v722_v40 = vadd.f32 %v2336_v30, %v721_v37  ;;  %v764_v42 = vsel %vm328_vm8, 0.0, %v760_v39  ;;  %v766_v43 = vsel %vm328_vm8, %v760_v39, 0.0  ;;  %v2119_v30 = vld [vmem:[%s2910_s29 + $0x10] sm:$0xff] }
 0x595   :  { %v772_v48 = vrot.slane %v764_v42, 1  ;;  %v773_v49 = vrot.slane %v766_v43, 1  ;;  %v784_v50 = vrot.slane %v764_v42, 2  ;;  %v785_v51 = vrot.slane %v766_v43, 2  ;;  %1018 = vmatpush.bf16.msrb.mxu0 %v2119_v30 }
 0x596   :  { %v755_v41 = vadd.f32 %v752_v38, %v722_v40 }
 0x597   :  { %v786_v59 = vsel %vm295_vm0, %v784_v50, %v785_v51  ;;  %v774_v61 = vsel %vm349_vm9, %v772_v48, %v773_v49 }
 0x598   :  { %v757_v44 = vmax.f32 %v755_v41, 0.0 }
 0x599   :  { %1019 = vmatpush.bf16.msrb.mxu0 %v2118_v36 }
 0x59a   :  { %v761_v45 = vrot.slane %v757_v44, 7  ;;  %v1041_v46 = vpack.c.bf16 %v757_v44, %v756_v35 }
 0x59c   :  { %v765_v52 = vsel %vm328_vm8, 0.0, %v761_v45  ;;  %v767_v53 = vsel %vm328_vm8, %v761_v45, 0.0  ;;  %1925 = vmatmul.msk.bf16.vlgmr.msrb.gmra.mxu1 %vm376_vm10, %v1041_v46 }
 0x59d   :  { %v775_v54 = vrot.slane %v765_v52, 1  ;;  %v776_v55 = vrot.slane %v767_v53, 1  ;;  %v787_v56 = vrot.slane %v765_v52, 2  ;;  %v788_v57 = vrot.slane %v767_v53, 2 }
 0x59f   :  { %v789_v60 = vsel %vm295_vm0, %v787_v56, %v788_v57  ;;  %v777_v62 = vsel %vm349_vm9, %v775_v54, %v776_v55  ;;  %v2117_v55 = vld [vmem:[%s2910_s29] sm:$0xff] }
 0x5a0   :  { %v2316_v63 = vpack.i.bf16 %v789_v60, %v786_v59  ;;  %v2311_v0 = vpack.i.bf16 %v777_v62, %v774_v61  ;;  %1020 = vmatpush.bf16.msrb.mxu0 %v2117_v55 }
 0x5a2   :  { %2317 = vrot.lane.b32.xlu0 %v2316_v63, %s2408_s9  ;;  %2312 = vrot.lane.b32.xlu2 %v2311_v0, %s2407_s5  ;;  %v2142_v63 = vld [vmem:[%s2912_s8 + $0x58] sm:$0xff]  ;;  %v2141_v0 = vld [vmem:[%s2912_s8 + $0x50] sm:$0xff] }
 0x5a4   :  { %1242 = vmatpush.bf16.msra.mxu0 %v2142_v63  ;;  %v2149_v63 = vld [vmem:[%s2916_s30 + $0x30] sm:$0xff] }
 0x5a8   :  { %1243 = vmatpush.bf16.msra.mxu0 %v2141_v0  ;;  %v2157_v0 = vld [vmem:[%s2916_s30 + $0x70] sm:$0xff] }
 0x5ac   :  { %1244 = vmatpush.bf16.msra.mxu0 %v2140_v1  ;;  %v2165_v1 = vld [vmem:[%s2916_s30 + $0xb0] sm:$0xff] }
 0x5b0   :  { %1245 = vmatpush.bf16.msra.mxu0 %v2139_v2  ;;  %v2148_v2 = vld [vmem:[%s2916_s30 + $0x28] sm:$0xff] }
 0x5fc   :  { %v2313_v7 = vpop.permute.xlu2 %2312 }
 0x5fd   :  { %v2315_v8 = vunpack.i.h.bf16 %v2313_v7  ;;  %v2314_v9 = vunpack.i.l.bf16 %v2313_v7  ;;  %v2337_v7 = vld [vmem:[%s2914_s19] ss:$0 sm:$0xff] }
 0x5ff   :  { %v797_v13 = vsel %vm376_vm10, %v765_v52, %v2315_v8  ;;  %v796_v14 = vsel %vm376_vm10, %v764_v42, %v2314_v9  ;;  %v2136_v8 = vld [vmem:[%s2912_s8 + $0x28] sm:$0xff] }
 0x600   :  { %1226 = vmatpush.bf16.msrb.mxu3 %v2136_v8  ;;  %v2163_v8 = vld [vmem:[%s2916_s30 + $0xa0] sm:$0xff] }
 0x614   :  { %v2318_v10 = vpop.permute.xlu0 %2317 }
 0x615   :  { %v2320_v11 = vunpack.i.h.bf16 %v2318_v10  ;;  %v2319_v12 = vunpack.i.l.bf16 %v2318_v10 }
 0x617   :  { %v798_v15 = vsel %vm650_vm12, %v796_v14, %v2319_v12  ;;  %v799_v17 = vsel %vm650_vm12, %v797_v13, %v2320_v11  ;;  %v2135_v14 = vld [vmem:[%s2912_s8 + $0x20] sm:$0xff] }
 0x618   :  { %v800_v18 = vpack.c.bf16 %v799_v17, %v798_v15  ;;  %1227 = vmatpush.bf16.msrb.mxu3 %v2135_v14  ;;  %v2161_v14 = vld [vmem:[%s2916_s30 + $0x90] sm:$0xff] }
 0x619   :  { %v1074_v6 = vpop.f32.mrf.mxu1 }
 0x61a   :  { %1867 = vmatmul.msk.bf16.vlgmr.msra.gmra.mxu3 %vm706_vm13, %v800_v18  ;;  %v1075_v12 = vadd.f32 %v2337_v7, %v1074_v6  ;;  %v2134_v18 = vld [vmem:[%s2912_s8 + $0x18] sm:$0xff] }
 0x61b   :  { %v2146_v6 = vld [vmem:[%s2916_s30 + $0x18] sm:$0xff] }
 0x61c   :  { %1228 = vmatpush.bf16.msrb.mxu3 %v2134_v18  ;;  %v2160_v18 = vld [vmem:[%s2916_s30 + $0x88] sm:$0xff] }
 0x621   :  { %v1076_v19 = vpop.f32.mrf.mxu1 }
 0x622   :  { %v1077_v47 = vadd.f32 %v2337_v7, %v1076_v19  ;;  %v2155_v7 = vld [vmem:[%s2916_s30 + $0x60] sm:$0xff] }
 0x623   :  { %v2151_v19 = vld [vmem:[%s2916_s30 + $0x40] sm:$0xff] }
 0x69d   :  { %v865_v25 = vpop.f32.mrf.mxu3 }
 0x69e   :  { %v866_v26 = vadd.f32 %v2338_v24, %v865_v25 }
 0x6a0   :  { %v870_v27 = vmax.f32 %v866_v26, 0.0 }
 0x6a2   :  { %v874_v29 = vrot.slane %v870_v27, 7 }
 0x6a4   :  { %v878_v33 = vsel %vm328_vm8, 0.0, %v874_v29  ;;  %v880_v34 = vsel %vm328_vm8, %v874_v29, 0.0 }
 0x6a5   :  { %v867_v31 = vpop.f32.mrf.mxu3  ;;  %v886_v38 = vrot.slane %v878_v33, 1  ;;  %v887_v39 = vrot.slane %v880_v34, 1  ;;  %v898_v40 = vrot.slane %v878_v33, 2  ;;  %v899_v41 = vrot.slane %v880_v34, 2 }
 0x6a6   :  { %v868_v32 = vadd.f32 %v2338_v24, %v867_v31  ;;  %v2133_v24 = vld [vmem:[%s2912_s8 + $0x10] sm:$0xff] }
 0x6a7   :  { %v900_v49 = vsel %vm295_vm0, %v898_v40, %v899_v41  ;;  %v888_v51 = vsel %vm349_vm9, %v886_v38, %v887_v39  ;;  %1229 = vmatpush.bf16.msrb.mxu3 %v2133_v24 }
 0x6a8   :  { %v871_v35 = vmax.f32 %v868_v32, 0.0 }
 0x6aa   :  { %v875_v37 = vrot.slane %v871_v35, 7 }
 0x6ab   :  { %1230 = vmatpush.bf16.msrb.mxu3 %v2132_v28 }
 0x6ac   :  { %v879_v42 = vsel %vm328_vm8, 0.0, %v875_v37  ;;  %v881_v43 = vsel %vm328_vm8, %v875_v37, 0.0 }
 0x6ad   :  { %v889_v44 = vrot.slane %v879_v42, 1  ;;  %v890_v45 = vrot.slane %v881_v43, 1  ;;  %v901_v46 = vrot.slane %v879_v42, 2  ;;  %v902_v48 = vrot.slane %v881_v43, 2 }
 0x6af   :  { %v903_v50 = vsel %vm295_vm0, %v901_v46, %v902_v48  ;;  %v891_v52 = vsel %vm349_vm9, %v889_v44, %v890_v45  ;;  %v2131_v48 = vld [vmem:[%s2912_s8] sm:$0xff] }
 0x6b0   :  { %v909_v53 = vpack.c.bf16 %v903_v50, %v900_v49  ;;  %v2321_v54 = vpack.i.bf16 %v891_v52, %v888_v51  ;;  %1231 = vmatpush.bf16.msrb.mxu3 %v2131_v48  ;;  %v2170_v49 = vld [vmem:[%s2915_s24 + $0x18] sm:$0xff]  ;;  %v2169_v50 = vld [vmem:[%s2915_s24 + $0x10] sm:$0xff]  ;;  %v2168_v51 = vld [vmem:[%s2915_s24 + $0x8] sm:$0xff] }
 0x6b1   :  { %v2167_v52 = vld [vmem:[%s2915_s24] sm:$0xff] }
 0x6b2   :  { %1916 = vmatmul.msk.bf16.vlgmr.msra.gmra.mxu2 %vm650_vm12, %v909_v53  ;;  %2322 = vrot.lane.b32.xlu1 %v2321_v54, %s2408_s9 }
 0x6b4   :  { %1569 = vmatpush.bf16.msra.mxu3 %v2170_v49 }
 0x6b8   :  { %1570 = vmatpush.bf16.msra.mxu3 %v2169_v50 }
 0x6bc   :  { %1571 = vmatpush.bf16.msra.mxu3 %v2168_v51  ;;  %v1650_v51 = vld [vmem:[%s2558_s27 + $0x78] sm:$0xff] }
 0x6c0   :  { %1572 = vmatpush.bf16.msra.mxu3 %v2167_v52  ;;  %v1649_v52 = vld [vmem:[%s2558_s27 + $0x70] sm:$0xff] }
 0x724   :  { %v2323_v56 = vpop.permute.xlu1 %2322 }
 0x725   :  { %v2325_v57 = vunpack.i.h.bf16 %v2323_v56  ;;  %v2324_v59 = vunpack.i.l.bf16 %v2323_v56 }
 0x727   :  { %v906_v60 = vsel %vm650_vm12, %v878_v33, %v2324_v59  ;;  %v907_v61 = vsel %vm650_vm12, %v879_v42, %v2325_v57 }
 0x728   :  { %v908_v62 = vpack.c.bf16 %v907_v61, %v906_v60  ;;  %v2150_v60 = vld [vmem:[%s2916_s30 + $0x38] sm:$0xff] }
 0x729   :  { %v2158_v61 = vld [vmem:[%s2916_s30 + $0x78] sm:$0xff]  ;;  %1483 = vmatpush.bf16.msrb.mxu2 %v2150_v60  ;;  %v1663_v60 = vld [vmem:[%s2558_s27 + $0xe0] sm:$0xff] }
 0x72a   :  { %1021 = vmatmul.bf16.vlgmr.msrb.gmra.mxu0 %v908_v62  ;;  %v2166_v62 = vld [vmem:[%s2916_s30 + $0xb8] sm:$0xff]  ;;  %1497 = vmatpush.bf16.msra.mxu1 %v2158_v61  ;;  %v1645_v61 = vld [vmem:[%s2558_s27 + $0x50] sm:$0xff] }
 0x72b   :  { %1511 = vmatpush.bf16.msrb.mxu0 %v2166_v62  ;;  %v1662_v62 = vld [vmem:[%s2558_s27 + $0xd8] sm:$0xff] }
 0x72d   :  { %1484 = vmatpush.bf16.msrb.mxu2 %v2149_v63  ;;  %v1644_v63 = vld [vmem:[%s2558_s27 + $0x48] sm:$0xff] }
 0x72e   :  { %1498 = vmatpush.bf16.msra.mxu1 %v2157_v0  ;;  %v1661_v0 = vld [vmem:[%s2558_s27 + $0xd0] sm:$0xff] }
 0x72f   :  { %1512 = vmatpush.bf16.msrb.mxu0 %v2165_v1  ;;  %v1643_v1 = vld [vmem:[%s2558_s27 + $0x40] sm:$0xff] }
 0x731   :  { %1485 = vmatpush.bf16.msrb.mxu2 %v2148_v2  ;;  %v1660_v2 = vld [vmem:[%s2558_s27 + $0xc8] sm:$0xff] }
 0x732   :  { %1499 = vmatpush.bf16.msra.mxu1 %v2156_v4  ;;  %v1659_v4 = vld [vmem:[%s2558_s27 + $0xc0] sm:$0xff] }
 0x735   :  { %v1036_v9 = vpop.f32.mrf.mxu2  ;;  %1486 = vmatpush.bf16.msrb.mxu2 %v2147_v3  ;;  %v1642_v3 = vld [vmem:[%s2558_s27 + $0x38] sm:$0xff] }
 0x736   :  { %1500 = vmatpush.bf16.msra.mxu1 %v2155_v7  ;;  %v1640_v7 = vld [vmem:[%s2558_s27 + $0x28] sm:$0xff] }
 0x739   :  { %1487 = vmatpush.bf16.msrb.mxu2 %v2146_v6  ;;  %v1658_v6 = vld [vmem:[%s2558_s27 + $0xb8] sm:$0xff] }
 0x73d   :  { %v1038_v22 = vpop.f32.mrf.mxu2 }
 0x7a7   :  { %v1022_v10 = vpop.f32.mrf.mxu0 }
 0x7a8   :  { %v1023_v11 = vadd.f32 %v2339_v5, %v1022_v10  ;;  %v2154_v10 = vld [vmem:[%s2916_s30 + $0x58] sm:$0xff] }
 0x7a9   :  { %1501 = vmatpush.bf16.msra.mxu1 %v2154_v10  ;;  %v1656_v10 = vld [vmem:[%s2558_s27 + $0xa8] sm:$0xff] }
 0x7aa   :  { %v1037_v13 = vadd.f32 %v1036_v9, %v1023_v11  ;;  %v2145_v9 = vld [vmem:[%s2916_s30 + $0x10] sm:$0xff]  ;;  %v2162_v11 = vld [vmem:[%s2916_s30 + $0x98] sm:$0xff] }
 0x7ab   :  { %1488 = vmatpush.bf16.msrb.mxu2 %v2145_v9  ;;  %v1639_v9 = vld [vmem:[%s2558_s27 + $0x20] sm:$0xff] }
 0x7ac   :  { %v1079_v15 = vadd.f32 %v1075_v12, %v1037_v13  ;;  %v2144_v12 = vld [vmem:[%s2916_s30 + $0x8] sm:$0xff]  ;;  %v2153_v13 = vld [vmem:[%s2916_s30 + $0x50] sm:$0xff] }
 0x7ad   :  { %1502 = vmatpush.bf16.msra.mxu1 %v2153_v13  ;;  %v1637_v13 = vld [vmem:[%s2558_s27 + $0x10] sm:$0xff] }
 0x7ae   :  { %v1081_v17 = vmax.f32 %v1079_v15, 0.0  ;;  %v2143_v15 = vld [vmem:[%s2916_s30] sm:$0xff] }
 0x7af   :  { %v1024_v20 = vpop.f32.mrf.mxu0  ;;  %1489 = vmatpush.bf16.msrb.mxu2 %v2144_v12  ;;  %v1655_v12 = vld [vmem:[%s2558_s27 + $0xa0] sm:$0xff] }
 0x7b0   :  { %v1025_v21 = vadd.f32 %v2339_v5, %v1024_v20  ;;  %v1085_v23 = vrot.slane %v1081_v17, 7  ;;  %v2164_v5 = vld [vmem:[%s2916_s30 + $0xa8] sm:$0xff]  ;;  %v2159_v20 = vld [vmem:[%s2916_s30 + $0x80] sm:$0xff] }
 0x7b1   :  { %1513 = vmatpush.bf16.msrb.mxu0 %v2164_v5  ;;  %v1641_v5 = vld [vmem:[%s2558_s27 + $0x30] sm:$0xff] }
 0x7b2   :  { %v1039_v58 = vadd.f32 %v1038_v22, %v1025_v21  ;;  %v1089_v25 = vsel %vm328_vm8, 0.0, %v1085_v23  ;;  %v1091_v26 = vsel %vm328_vm8, %v1085_v23, 0.0  ;;  %v2340_v21 = vld [vmem:[%s2917_s12] ss:$0 sm:$0xff] }
 0x7b3   :  { %v1109_v31 = vrot.slane %v1089_v25, 2  ;;  %v1110_v32 = vrot.slane %v1091_v26, 2  ;;  %v1097_v33 = vrot.slane %v1089_v25, 1  ;;  %v1098_v34 = vrot.slane %v1091_v26, 1  ;;  %1490 = vmatpush.bf16.msrb.mxu2 %v2143_v15  ;;  %v2342_v15 = vld [vmem:[%s2918_s2] ss:$0 sm:$0xff] }
 0x7b4   :  { %v1080_v16 = vadd.f32 %v1077_v47, %v1039_v58 }
 0x7b5   :  { %v1111_v41 = vsel %vm295_vm0, %v1109_v31, %v1110_v32  ;;  %v1099_v43 = vsel %vm349_vm9, %v1097_v33, %v1098_v34  ;;  %1514 = vmatpush.bf16.msrb.mxu0 %v2163_v8  ;;  %v1657_v8 = vld [vmem:[%s2558_s27 + $0xb0] sm:$0xff] }
 0x7b6   :  { %v1082_v27 = vmax.f32 %v1080_v16, 0.0 }
 0x7b7   :  { %1671 = vmatpush.msra.mxu2 %v1650_v51 }
 0x7b8   :  { %v1086_v29 = vrot.slane %v1082_v27, 7  ;;  %v1525_v30 = vpack.c.bf16 %v1082_v27, %v1081_v17  ;;  %v2152_v17 = vld [vmem:[%s2916_s30 + $0x48] sm:$0xff] }
 0x7b9   :  { %1515 = vmatpush.bf16.msrb.mxu0 %v2162_v11  ;;  %1503 = vmatpush.bf16.msra.mxu1 %v2152_v17  ;;  %v1638_v11 = vld [vmem:[%s2558_s27 + $0x18] sm:$0xff]  ;;  %v1636_v17 = vld [vmem:[%s2558_s27 + $0x8] sm:$0xff] }
 0x7ba   :  { %v1090_v35 = vsel %vm328_vm8, 0.0, %v1086_v29  ;;  %v1092_v36 = vsel %vm328_vm8, %v1086_v29, 0.0  ;;  %1672 = vmatpush.msra.mxu2 %v1649_v52 }
 0x7bb   :  { %v1112_v37 = vrot.slane %v1090_v35, 2  ;;  %v1113_v38 = vrot.slane %v1092_v36, 2  ;;  %v1100_v39 = vrot.slane %v1090_v35, 1  ;;  %v1101_v40 = vrot.slane %v1092_v36, 1 }
 0x7bd   :  { %v1114_v42 = vsel %vm295_vm0, %v1112_v37, %v1113_v38  ;;  %v1102_v44 = vsel %vm349_vm9, %v1100_v39, %v1101_v40  ;;  %1516 = vmatpush.bf16.msrb.mxu0 %v2161_v14  ;;  %1504 = vmatpush.bf16.msra.mxu1 %v2151_v19  ;;  %v1654_v14 = vld [vmem:[%s2558_s27 + $0x98] sm:$0xff] }
 0x7be   :  { %v1120_v45 = vpack.c.bf16 %v1114_v42, %v1111_v41  ;;  %v2326_v46 = vpack.i.bf16 %v1102_v44, %v1099_v43 }
 0x7c0   :  { %1974 = vmatmul.msk.bf16.vlgmr.msra.gmra.mxu0 %vm650_vm12, %v1120_v45  ;;  %2327 = vrot.lane.b32.xlu2 %v2326_v46, %s2408_s9 }
 0x7c1   :  { %1517 = vmatpush.bf16.msrb.mxu0 %v2160_v18  ;;  %v1653_v18 = vld [vmem:[%s2558_s27 + $0x90] sm:$0xff] }
 0x7c5   :  { %1518 = vmatpush.bf16.msrb.mxu0 %v2159_v20  ;;  %v1635_v20 = vld [vmem:[%s2558_s27] sm:$0xff] }
 0x81a   :  { %v2328_v53 = vpop.permute.xlu2 %2327 }
 0x81b   :  { %v2330_v54 = vunpack.i.h.bf16 %v2328_v53  ;;  %v2329_v55 = vunpack.i.l.bf16 %v2328_v53  ;;  %v1666_v53 = vld [vmem:[%s2558_s27 + $0xf8] sm:$0xff] }
 0x81c   :  { %1691 = vmatpush.msrb.mxu1 %v1666_v53 }
 0x81d   :  { %v1118_v56 = vsel %vm650_vm12, %v1090_v35, %v2330_v54  ;;  %v1117_v57 = vsel %vm650_vm12, %v1089_v25, %v2329_v55  ;;  %v1648_v54 = vld [vmem:[%s2558_s27 + $0x68] sm:$0xff]  ;;  %v1665_v55 = vld [vmem:[%s2558_s27 + $0xf0] sm:$0xff] }
 0x81e   :  { %v1119_v59 = vpack.c.bf16 %v1118_v56, %v1117_v57  ;;  %1673 = vmatpush.msra.mxu2 %v1648_v54  ;;  %1692 = vmatpush.msrb.mxu1 %v1665_v55  ;;  %v1647_v56 = vld [vmem:[%s2558_s27 + $0x60] sm:$0xff]  ;;  %v1664_v57 = vld [vmem:[%s2558_s27 + $0xe8] sm:$0xff] }
 0x820   :  { %1232 = vmatmul.bf16.vlgmr.msrb.gmra.mxu3 %v1119_v59  ;;  %1674 = vmatpush.msra.mxu2 %v1647_v56  ;;  %v1646_v59 = vld [vmem:[%s2558_s27 + $0x58] sm:$0xff] }
 0x821   :  { %1693 = vmatpush.msrb.mxu1 %v1664_v57 }
 0x822   :  { %1675 = vmatpush.msra.mxu2 %v1646_v59 }
 0x823   :  { %1694 = vmatpush.msrb.mxu1 %v1663_v60 }
 0x824   :  { %1676 = vmatpush.msra.mxu2 %v1645_v61 }
 0x825   :  { %1695 = vmatpush.msrb.mxu1 %v1662_v62 }
 0x826   :  { %1677 = vmatpush.msra.mxu2 %v1644_v63 }
 0x827   :  { %1696 = vmatpush.msrb.mxu1 %v1661_v0 }
 0x828   :  { %1678 = vmatpush.msra.mxu2 %v1643_v1 }
 0x829   :  { %1697 = vmatpush.msrb.mxu1 %v1660_v2 }
 0x82a   :  { %1679 = vmatpush.msra.mxu2 %v1642_v3 }
 0x82b   :  { %1698 = vmatpush.msrb.mxu1 %v1659_v4 }
 0x82c   :  { %1680 = vmatpush.msra.mxu2 %v1641_v5 }
 0x82d   :  { %1699 = vmatpush.msrb.mxu1 %v1658_v6 }
 0x82e   :  { %1681 = vmatpush.msra.mxu2 %v1640_v7 }
 0x82f   :  { %1700 = vmatpush.msrb.mxu1 %v1657_v8 }
 0x830   :  { %2092 = vmatmul.msk.bf16.vlgmr.msra.gmra.mxu3 %vm650_vm12, %v1525_v30  ;;  %1682 = vmatpush.msra.mxu2 %v1639_v9 }
 0x831   :  { %1701 = vmatpush.msrb.mxu1 %v1656_v10 }
 0x832   :  { %1683 = vmatpush.msra.mxu2 %v1638_v11 }
 0x833   :  { %1702 = vmatpush.msrb.mxu1 %v1655_v12 }
 0x834   :  { %1684 = vmatpush.msra.mxu2 %v1637_v13 }
 0x835   :  { %1703 = vmatpush.msrb.mxu1 %v1654_v14 }
 0x836   :  { %1685 = vmatpush.msra.mxu2 %v1636_v17  ;;  %v2343_v17 = vld [vmem:[%s2563_s4] ss:$0 sm:$0xff] }
 0x837   :  { %1704 = vmatpush.msrb.mxu1 %v1653_v18 }
 0x838   :  { %1686 = vmatpush.msra.mxu2 %v1635_v20 }
 0x83d   :  { %v1247_v22 = vpop.f32.mrf.mxu0 }
 0x845   :  { %v1249_v27 = vpop.f32.mrf.mxu0 }
 0x8a3   :  { %v1233_v47 = vpop.f32.mrf.mxu3 }
 0x8a4   :  { %v1234_v23 = vadd.f32 %v2340_v21, %v1233_v47 }
 0x8a6   :  { %v1248_v58 = vadd.f32 %v1247_v22, %v1234_v23  ;;  %v2341_v23 = vld [vmem:[%s2919_s7] ss:$0 sm:$0xff] }
 0x8a8   :  { %v1252_v24 = vmax.f32 %v1248_v58, 0.0 }
 0x8aa   :  { %v1256_v25 = vrot.slane %v1252_v24, 7 }
 0x8ab   :  { %v1235_v16 = vpop.f32.mrf.mxu3 }
 0x8ac   :  { %v1236_v26 = vadd.f32 %v2340_v21, %v1235_v16  ;;  %v1260_v29 = vsel %vm328_vm8, 0.0, %v1256_v25  ;;  %v1262_v30 = vsel %vm328_vm8, %v1256_v25, 0.0  ;;  %v1652_v21 = vld [vmem:[%s2558_s27 + $0x88] sm:$0xff] }
 0x8ad   :  { %v1268_v33 = vrot.slane %v1260_v29, 1  ;;  %v1269_v34 = vrot.slane %v1262_v30, 1  ;;  %v1276_v35 = vrot.slane %v1260_v29, 2  ;;  %v1277_v36 = vrot.slane %v1262_v30, 2  ;;  %1705 = vmatpush.msrb.mxu1 %v1652_v21 }
 0x8ae   :  { %v1250_v28 = vadd.f32 %v1249_v27, %v1236_v26 }
 0x8af   :  { %v1270_v44 = vsel %vm349_vm9, %v1268_v33, %v1269_v34  ;;  %v1278_v46 = vsel %vm295_vm0, %v1276_v35, %v1277_v36 }
 0x8b0   :  { %v1253_v31 = vmax.f32 %v1250_v28, 0.0 }
 0x8b2   :  { %v1257_v32 = vrot.slane %v1253_v31, 7 }
 0x8b3   :  { %v1574_v19 = vpop.f32.mrf.mxu3 }
 0x8b4   :  { %v1261_v37 = vsel %vm328_vm8, 0.0, %v1257_v32  ;;  %v1263_v38 = vsel %vm328_vm8, %v1257_v32, 0.0  ;;  %v2074_v39 = vpack.c.bf16 %v1257_v32, %v1256_v25  ;;  %v1651_v25 = vld [vmem:[%s2558_s27 + $0x80] sm:$0xff]  ;;  %v1575_v26 = vadd.f32 %v2341_v23, %v1574_v19  ;;  %s2409_s27 = smov [#allocation2]  }
 0x8b5   :  { %v1271_v40 = vrot.slane %v1261_v37, 1  ;;  %v1272_v41 = vrot.slane %v1263_v38, 1  ;;  %v1279_v42 = vrot.slane %v1261_v37, 2  ;;  %v1280_v43 = vrot.slane %v1263_v38, 2  ;;  %1706 = vmatpush.msrb.mxu1 %v1651_v25  ;;  %s1718_s10 = sshll.u32 %s2409_s27, 4  ;;  %s1719_s10 = int_to_ptr.vmem [resolvable:$true] %s1718_s10 }
 0x8b6   :  { %2075 = vmatmul.msk.bf16.vlgmr.msrb.gmra.mxu2 %vm2073_vm15, %v2074_v39 }
 0x8b7   :  { %v1273_v45 = vsel %vm349_vm9, %v1271_v40, %v1272_v41  ;;  %v1281_v48 = vsel %vm295_vm0, %v1279_v42, %v1280_v43  ;;  %vm1623_vm0 = vcmask 1041409  }
 0x8b8   :  { %v1285_v49 = vpack.c.bf16 %v1273_v45, %v1270_v44  ;;  %v1286_v50 = vpack.c.bf16 %v1281_v48, %v1278_v46 }
 0x8ba   :  { %1505 = vmatmul.bf16.vlgmr.msra.gmra.mxu1 %v1285_v49  ;;  %1519 = vmatmul.bf16.vlgmr.msrb.gmra.mxu0 %v1286_v50 }
 0x8bb   :  { %v1576_v32 = vpop.f32.mrf.mxu3 }
 0x8bc   :  { %v1577_v39 = vadd.f32 %v2341_v23, %v1576_v32 }
 0x937   :  { %v1506_v22 = vpop.f32.mrf.mxu1  ;;  %v1520_v24 = vpop.f32.mrf.mxu0 }
 0x939   :  { %v1492_v47 = vpop.f32.mrf.mxu2 }
 0x93a   :  { %v1493_v58 = vadd.f32 %v2342_v15, %v1492_v47 }
 0x93c   :  { %v1507_v16 = vadd.f32 %v1506_v22, %v1493_v58 }
 0x93e   :  { %v1521_v27 = vadd.f32 %v1520_v24, %v1507_v16 }
 0x93f   :  { %v1508_v33 = vpop.f32.mrf.mxu1  ;;  %v1522_v38 = vpop.f32.mrf.mxu0 }
 0x940   :  { %v1579_v28 = vadd.f32 %v1575_v26, %v1521_v27 }
 0x941   :  { %v1494_v29 = vpop.f32.mrf.mxu2 }
 0x942   :  { %v1581_v30 = vmax.f32 %v1579_v28, 0.0  ;;  %v1495_v31 = vadd.f32 %v2342_v15, %v1494_v29 }
 0x944   :  { %v1583_v34 = vsel %vm349_vm9, %v1581_v30, 0.0  ;;  %v1601_v35 = vrot.slane %v1581_v30, 1  ;;  %v1509_v36 = vadd.f32 %v1508_v33, %v1495_v31 }
 0x945   :  { %v1584_v37 = vrot.slane %v1583_v34, 4 }
 0x946   :  { %v1605_v40 = vsel %vm349_vm9, %v1601_v35, 0.0  ;;  %v1523_v41 = vadd.f32 %v1522_v38, %v1509_v36 }
 0x947   :  { %v1585_v42 = vadd.f32 %v1584_v37, %v1583_v34  ;;  %v1606_v43 = vrot.slane %v1605_v40, 4 }
 0x948   :  { %v1580_v44 = vadd.f32 %v1577_v39, %v1523_v41 }
 0x949   :  { %v1586_v45 = vrot.slane %v1585_v42, 2  ;;  %v1607_v46 = vadd.f32 %v1606_v43, %v1605_v40 }
 0x94a   :  { %v1582_v48 = vmax.f32 %v1580_v44, 0.0 }
 0x94b   :  { %v1608_v49 = vrot.slane %v1607_v46, 2  ;;  %v1587_v53 = vadd.f32 %v1586_v45, %v1585_v42 }
 0x94c   :  { %v1590_v50 = vsel %vm349_vm9, %v1582_v48, 0.0  ;;  %v1602_v51 = vrot.slane %v1582_v48, 1 }
 0x94d   :  { %v1591_v52 = vrot.slane %v1590_v50, 4  ;;  %v1609_v57 = vadd.f32 %v1608_v49, %v1607_v46  ;;  %v1588_v61 = vrot.slane %v1587_v53, 1 }
 0x94e   :  { %v1612_v54 = vsel %vm349_vm9, %v1602_v51, 0.0 }
 0x94f   :  { %v1592_v55 = vadd.f32 %v1591_v52, %v1590_v50  ;;  %v1613_v56 = vrot.slane %v1612_v54, 4  ;;  %v1610_v63 = vrot.slane %v1609_v57, 1  ;;  %v1589_v1 = vadd.f32 %v1588_v61, %v1587_v53 }
 0x951   :  { %v1593_v59 = vrot.slane %v1592_v55, 2  ;;  %v1614_v60 = vadd.f32 %v1613_v56, %v1612_v54  ;;  %v1611_v5 = vadd.f32 %v1610_v63, %v1609_v57  ;;  %v1597_v7 = vmul.f32 0.14285715, %v1589_v1 }
 0x953   :  { %v1594_v62 = vadd.f32 %v1593_v59, %v1592_v55  ;;  %v1615_v0 = vrot.slane %v1614_v60, 2  ;;  %v1619_v11 = vmul.f32 0.14285715, %v1611_v5 }
 0x955   :  { %v1595_v2 = vrot.slane %v1594_v62, 1  ;;  %v1616_v3 = vadd.f32 %v1615_v0, %v1614_v60 }
 0x957   :  { %v1596_v4 = vadd.f32 %v1595_v2, %v1594_v62  ;;  %v1617_v6 = vrot.slane %v1616_v3, 1 }
 0x959   :  { %v1598_v8 = vmul.f32 0.14285715, %v1596_v4  ;;  %v1618_v9 = vadd.f32 %v1617_v6, %v1616_v3 }
 0x95b   :  { %v1624_v10 = vsel %vm1623_vm0, %v1598_v8, %v1597_v7  ;;  %v1620_v12 = vmul.f32 0.14285715, %v1618_v9 }
 0x95c   :  { %1687 = vmatmul.f32.vlgmr.msra.gmra.mxu2 %v1624_v10 }
 0x95d   :  { %v1628_v13 = vsel %vm1623_vm0, %v1620_v12, %v1619_v11 }
 0x95e   :  { %v1630_v14 = vrot.slane %v1628_v13, 6  ;;  %1707 = vmatmul.f32.vlgmr.msrb.gmra.mxu1 %v1628_v13 }
 0x960   :  { %v1632_v15 = vsel %vm1631_vm1, %v1624_v10, %v1630_v14 }
 0x961   :  { %1634 = vst [vmem:[%s2573_s20] sm:$0xf] %v1632_v15 }
 0x9db   :  { %v1708_v20 = vpop.f32.mrf.mxu1 }
 0x9df   :  { %v1688_v18 = vpop.f32.mrf.mxu2 }
 0x9e0   :  { %v1689_v19 = vadd.f32 %v2343_v17, %v1688_v18 }
 0x9e2   :  { %v1709_v21 = vadd.f32 %v1708_v20, %v1689_v19 }
 0x9e4   :  { %1712 = vst.msk [vmem:[#allocation2] sm:$0x3] %vm1711_vm2, %v1709_v21 }
 0x9e5   :  { %2367 = shalt.err (!%p2364_p4)
}
 0x9e6   :  { %1723 = dma.vmem_to_hbm [thread:$0]  %s1719_s10, 32, %s1721_s11, [#allocation3]  }
 0x9e7   :  { %2368 = dma.done.wait [#allocation3], 32  }
 0x9e8   :  { %2369 = vsyncadd [#allocation3], 4294967264 }
 0x9e9   :  { %1732 = vsyncpa [#allocation3], 1 }

</bundles_post_ra>
